<compile_context>
chip_gen: v5e
topology: v5e:2x2
jax: 0.10.0
libtpu: 0.0.40
codegen_flags: <defaults>
</compile_context>

<pallas_src>
import jax
import jax.numpy as jnp
from jax.experimental import pallas as pl
from jax.experimental.pallas import tpu as pltpu


# ---------------------------------------------------------------------------
# Fused DAM-block kernel (per batch element), activations in (H, W*C) layout:
#   3x3 conv (cam||sam combined, banded matmuls) -> channel-attention tail ||
#   spatial-attention tail -> residual -> concatenated output.
# ---------------------------------------------------------------------------
def dam_block_kernel(x_ref, a_ref, bconv_ref, p1_ref, b1_ref, ac_ref, w2_ref,
                     ecam_ref, msam_ref, b1m_ref, bs1_ref, as_ref,
                     b2m_ref, bs2_ref, esam_ref,
                     o_ref, padx_ref, pad1_ref, pad2_ref):
    # x_ref:    (H, W*Cin) bf16      unpadded input row-major, channels minor
    # a_ref:    (3, W*Cin, W*C) bf16 banded 3x3-conv matrices (one per kh)
    # bconv_ref:(1, W*C) f32         conv bias tiled to the lane layout
    # p1_ref:   (W*C, C2) f32        (GAP over cam channels) @ w1, folded on host
    # b1_ref:   (1, C2) f32 ; ac_ref (1,) SMEM   CAM 1x1 bias / PReLU alpha
    # w2_ref:   (C2, C2) f32         CAM second 1x1 conv (no bias)
    # ecam_ref: (C2, W*C) f32        expand cam attention to cam lanes (0 on sam)
    # msam_ref: (W*C, W) f32         mean over sam channels
    # b1m_ref:  (7, W, W) f32        banded 7x7 conv (pad=3)
    # b2m_ref:  (7, W, W) f32        banded 7x7 conv (pad=6, dilation=2)
    # bs1/as_/bs2: (1,) SMEM scalars
    # esam_ref: (W, W*C) f32         expand spatial attention to sam lanes
    # o_ref:    (H, W*C)
    H, WC = o_ref.shape
    W = msam_ref.shape[1]

    # ---- fused 3x3 conv (padding=1) as 3 banded lane-dense MXU matmuls ----
    # In-kernel zero padding: only two 1-row halo strips are zeroed; the interior
    # is overwritten by the copy of x (horizontal padding is folded into a_ref).
    padx_ref[0:1, :] = jnp.zeros((1, WC), jnp.bfloat16)
    padx_ref[H + 1:H + 2, :] = jnp.zeros((1, WC), jnp.bfloat16)
    padx_ref[1:H + 1, :] = x_ref[...]
    acc = jnp.zeros((H, WC), jnp.float32)
    for kh in range(3):
        acc = acc + jnp.dot(padx_ref[kh:kh + H, :], a_ref[kh],
                            preferred_element_type=jnp.float32)
    conv = acc + bconv_ref[...]                        # (H, W*C) f32

    # ---- channel attention (cam half): GAP -> 1x1 -> PReLU -> 1x1 -> sigmoid --
    rowsum = jnp.sum(conv, axis=0, keepdims=True)                       # (1, W*C)
    y1 = jnp.dot(rowsum, p1_ref[...],
                 preferred_element_type=jnp.float32) + b1_ref[...]      # (1, C2)
    y1 = jnp.where(y1 >= 0.0, y1, ac_ref[0] * y1)                       # PReLU
    y2 = jnp.dot(y1, w2_ref[...], preferred_element_type=jnp.float32)   # (1, C2)
    mult_c = jnp.dot(jax.nn.sigmoid(y2), ecam_ref[...],
                     preferred_element_type=jnp.float32)   # (1, W*C), 0 on sam lanes

    # ---- spatial attention (sam half): ch-mean -> 7x7 -> PReLU -> 7x7 d=2 -> sig
    m = jnp.dot(conv, msam_ref[...], preferred_element_type=jnp.float32)  # (H, W)

    # 7x7 conv, padding=3 (vertical halo in scratch; horizontal pad inside b1m)
    pad1_ref[0:3, :] = jnp.zeros((3, W), jnp.float32)
    pad1_ref[H + 3:H + 6, :] = jnp.zeros((3, W), jnp.float32)
    pad1_ref[3:H + 3, :] = m
    acc1 = jnp.zeros((H, W), jnp.float32)
    for kh in range(7):
        acc1 = acc1 + jnp.dot(pad1_ref[kh:kh + H, :], b1m_ref[kh],
                              preferred_element_type=jnp.float32)
    y = acc1 + bs1_ref[0]
    y = jnp.where(y >= 0.0, y, as_ref[0] * y)                           # PReLU

    # 7x7 conv, dilation=2, padding=6
    pad2_ref[0:6, :] = jnp.zeros((6, W), jnp.float32)
    pad2_ref[H + 6:H + 12, :] = jnp.zeros((6, W), jnp.float32)
    pad2_ref[6:H + 6, :] = y
    acc2 = jnp.zeros((H, W), jnp.float32)
    for kh in range(7):
        acc2 = acc2 + jnp.dot(pad2_ref[2 * kh:2 * kh + H, :], b2m_ref[kh],
                              preferred_element_type=jnp.float32)
    attn_s = jax.nn.sigmoid(acc2 + bs2_ref[0])                          # (H, W)
    mult_s = jnp.dot(attn_s, esam_ref[...],
                     preferred_element_type=jnp.float32)   # (H, W*C), 0 on cam lanes

    # out = conv * (1 + attn):  cam lanes get attn_c, sam lanes get attn_s
    o_ref[...] = (conv * (1.0 + mult_c + mult_s)).astype(o_ref.dtype)


def dam_block_apply(x2d, ops, out_dtype):
    """x2d: (N, H, W*C) bf16.  ops: host-fused per-block operands."""
    N, H, WC = x2d.shape
    W = ops["m_sam"].shape[1]
    C2 = ops["p1"].shape[1]
    return pl.pallas_call(
        dam_block_kernel,
        out_shape=jax.ShapeDtypeStruct((N, H, WC), out_dtype),
        grid=(N,),
        in_specs=[
            pl.BlockSpec((None, H, WC), lambda n: (n, 0, 0)),      # x
            pl.BlockSpec((3, WC, WC), lambda n: (0, 0, 0)),        # banded 3x3 conv
            pl.BlockSpec((1, WC), lambda n: (0, 0)),               # tiled conv bias
            pl.BlockSpec((WC, C2), lambda n: (0, 0)),              # GAP @ w1
            pl.BlockSpec((1, C2), lambda n: (0, 0)),               # b1
            pl.BlockSpec(memory_space=pltpu.MemorySpace.SMEM),     # alpha_c (1,)
            pl.BlockSpec((C2, C2), lambda n: (0, 0)),              # w2
            pl.BlockSpec((C2, WC), lambda n: (0, 0)),              # cam expand
            pl.BlockSpec((WC, W), lambda n: (0, 0)),               # sam channel-mean
            pl.BlockSpec((7, W, W), lambda n: (0, 0, 0)),          # banded 7x7
            pl.BlockSpec(memory_space=pltpu.MemorySpace.SMEM),     # bs1 (1,)
            pl.BlockSpec(memory_space=pltpu.MemorySpace.SMEM),     # alpha_s (1,)
            pl.BlockSpec((7, W, W), lambda n: (0, 0, 0)),          # banded dilated 7x7
            pl.BlockSpec(memory_space=pltpu.MemorySpace.SMEM),     # bs2 (1,)
            pl.BlockSpec((W, WC), lambda n: (0, 0)),               # sam expand
        ],
        out_specs=pl.BlockSpec((None, H, WC), lambda n: (n, 0, 0)),
        scratch_shapes=[
            pltpu.VMEM((H + 2, WC), jnp.bfloat16),     # vertically padded input
            pltpu.VMEM((H + 6, W), jnp.float32),       # pad=3 plane (rows only)
            pltpu.VMEM((H + 12, W), jnp.float32),      # pad=6 plane (rows only)
        ],
        compiler_params=pltpu.CompilerParams(
            dimension_semantics=("parallel",),
            vmem_limit_bytes=8 * 1024 * 1024,
        ),
    )(x2d, ops["A"], ops["b_conv"], ops["p1"], ops["b1"], ops["alpha_c"],
      ops["w2"], ops["e_cam"], ops["m_sam"], ops["b1m"], ops["bs1"],
      ops["alpha_s"], ops["b2m"], ops["bs2"], ops["e_sam"])


# ---------------------------------------------------------------------------
# Host-side operand fusion: banded conv matrices, tiled bias, pooling/expansion
# matrices.  All tiny and built under jit; they absorb the zero padding and the
# channel (de)interleaving so the kernel's loads/stores stay lane-dense.
# ---------------------------------------------------------------------------
def band_conv3x3(wconv, W):
    """wconv: (3, 3, Cin, Cout) -> (3, W*Cin, W*Cout) banded matrices A with
    A[kh][(w+kw-1)*Cin + cin, w*Cout + c] = wconv[kh, kw, cin, c] (pad=1)."""
    Cin, Cout = wconv.shape[2], wconv.shape[3]
    i = jnp.arange(W)[:, None]
    w = jnp.arange(W)[None, :]
    mats = []
    for kh in range(3):
        A = jnp.zeros((W * Cin, W * Cout), jnp.float32)
        for kw in range(3):
            S = (i == (w + kw - 1)).astype(jnp.float32)          # (W, W) shift
            A = A + jnp.kron(S, wconv[kh, kw].astype(jnp.float32))
        mats.append(A)
    return jnp.stack(mats, axis=0)


def band_matrix_1d(wk, W, pad, dilation):
    """wk: (7, 7) -> (7, W, W) banded B with
    B[kh, j, w] = wk[kh, (j-w+pad)//dilation] when valid, else 0."""
    K = wk.shape[1]
    j = jnp.arange(W)[:, None]
    w = jnp.arange(W)[None, :]
    d = j - w + pad
    kw = d // dilation
    valid = (d % dilation == 0) & (kw >= 0) & (kw < K)
    vals = wk[:, jnp.clip(kw, 0, K - 1)]                          # (7, W, W)
    return jnp.where(valid[None, :, :], vals, 0.0).astype(jnp.float32)


def fuse_block_params(blk, H, W):
    cam, sam = blk["cam"], blk["sam"]
    C2 = cam["w"].shape[-1]
    Cs = sam["w"].shape[-1]
    C = C2 + Cs
    wconv = jnp.concatenate([cam["w"], sam["w"]], axis=-1)        # (3,3,C,C)
    A = band_conv3x3(wconv, W).astype(jnp.bfloat16)
    b_cat = jnp.concatenate([cam["b"], sam["b"]], axis=-1)        # (1, C)
    b_tiled = jnp.tile(b_cat, (1, W)).astype(jnp.float32)         # (1, W*C)
    # global-average-pool over the cam lanes, folded with the first 1x1 weight
    pool = jnp.kron(jnp.ones((W, 1), jnp.float32),
                    jnp.eye(C, dtype=jnp.float32)[:, :C2]) / float(H * W)
    p1 = pool @ cam["w1"]                                         # (W*C, C2)
    e_cam = jnp.kron(jnp.ones((1, W), jnp.float32),
                     jnp.eye(C, dtype=jnp.float32)[:C2, :])       # (C2, W*C)
    sam_sel = (jnp.arange(C) >= C2).astype(jnp.float32)
    m_sam = jnp.kron(jnp.eye(W, dtype=jnp.float32),
                     sam_sel.reshape(C, 1) / float(Cs))           # (W*C, W)
    e_sam = jnp.kron(jnp.eye(W, dtype=jnp.float32),
                     sam_sel.reshape(1, C))                       # (W, W*C)
    b1m = band_matrix_1d(sam["w1"], W, pad=3, dilation=1)
    b2m = band_matrix_1d(sam["w2"], W, pad=6, dilation=2)
    return dict(A=A, b_conv=b_tiled, p1=p1, b1=cam["b1"], alpha_c=cam["alpha"],
                w2=cam["w2"], e_cam=e_cam, m_sam=m_sam,
                b1m=b1m, bs1=sam["b1"], alpha_s=sam["alpha"],
                b2m=b2m, bs2=sam["b2"], e_sam=e_sam)


def init_dam_params(key, C, n_dam_blocks=2):
    C2 = C // 2          # ChannelAttention out channels
    Cs = C - C2          # SpatialAttention out channels
    blocks = []
    for _ in range(n_dam_blocks):
        key, *ks = jax.random.split(key, 12)
        cam = {
            "w":     jax.random.normal(ks[0], (3, 3, C, C2), jnp.float32) * 0.1,
            "b":     jax.random.normal(ks[1], (1, C2), jnp.float32) * 0.1,
            "w1":    jax.random.normal(ks[2], (C2, C2), jnp.float32) * 0.1,  # (in,out)
            "b1":    jax.random.normal(ks[3], (1, C2), jnp.float32) * 0.1,
            "alpha": jnp.full((1,), 0.25, jnp.float32),                      # PReLU
            "w2":    jax.random.normal(ks[4], (C2, C2), jnp.float32) * 0.1,  # no bias
        }
        sam = {
            "w":     jax.random.normal(ks[5], (3, 3, C, Cs), jnp.float32) * 0.1,
            "b":     jax.random.normal(ks[6], (1, Cs), jnp.float32) * 0.1,
            "w1":    jax.random.normal(ks[7], (7, 7), jnp.float32) * 0.1,
            "b1":    jax.random.normal(ks[8], (1,), jnp.float32) * 0.1,
            "alpha": jnp.full((1,), 0.25, jnp.float32),
            "w2":    jax.random.normal(ks[9], (7, 7), jnp.float32) * 0.1,
            "b2":    jax.random.normal(ks[10], (1,), jnp.float32) * 0.1,
        }
        blocks.append({"cam": cam, "sam": sam})
    # DAM.conv_cam / conv_sam are unused in the PyTorch forward() -> omitted.
    return {"blocks": blocks}


def dam_forward(x_nchw, params):
    # NCHW in/out (PyTorch convention); (N, H, W*C) bf16 inside the kernels.
    N, C, H, W = x_nchw.shape
    x = jnp.transpose(x_nchw, (0, 2, 3, 1)).reshape(N, H, W * C)
    out = x.astype(jnp.bfloat16)
    blocks = params["blocks"]
    nblk = len(blocks)
    for i, blk in enumerate(blocks):
        ops = fuse_block_params(blk, H, W)
        # intermediate block outputs stay bf16 (halved HBM traffic); final is f32
        out_dtype = x_nchw.dtype if i == nblk - 1 else jnp.bfloat16
        out = dam_block_apply(out, ops, out_dtype)
    return jnp.transpose(out.reshape(N, H, W, C), (0, 3, 1, 2))


# ---------------------------------------------------------------------------
# Pure-JAX f32 reference (mirrors the PyTorch module) for validation.
# ---------------------------------------------------------------------------
def dam_reference(x_nchw, params):
    def conv2d(x, w, b, padding, dilation=1):
        out = jax.lax.conv_general_dilated(
            x, w, window_strides=(1, 1),
            padding=[(padding, padding), (padding, padding)],
            rhs_dilation=(dilation, dilation),
            dimension_numbers=("NHWC", "HWIO", "NHWC"))
        return out + b.reshape(1, 1, 1, -1)

    x = jnp.transpose(x_nchw, (0, 2, 3, 1))
    inp = x
    for blk in params["blocks"]:
        cam, sam = blk["cam"], blk["sam"]
        xc = conv2d(inp, cam["w"], cam["b"], padding=1)
        pooled = jnp.mean(xc, axis=(1, 2), keepdims=True)
        y1 = jnp.einsum("nhwc,cd->nhwd", pooled, cam["w1"]) + cam["b1"].reshape(1, 1, 1, -1)
        y1 = jnp.where(y1 >= 0, y1, cam["alpha"][0] * y1)
        attn_c = jax.nn.sigmoid(jnp.einsum("nhwc,cd->nhwd", y1, cam["w2"]))
        cam_out = xc + xc * attn_c
        xs = conv2d(inp, sam["w"], sam["b"], padding=1)
        m = jnp.mean(xs, axis=3, keepdims=True)
        s1 = conv2d(m, sam["w1"].reshape(7, 7, 1, 1), sam["b1"], padding=3)
        s1 = jnp.where(s1 >= 0, s1, sam["alpha"][0] * s1)
        s2 = conv2d(s1, sam["w2"].reshape(7, 7, 1, 1), sam["b2"], padding=6, dilation=2)
        attn_s = jax.nn.sigmoid(s2)
        sam_out = xs + xs * attn_s
        inp = jnp.concatenate([cam_out, sam_out], axis=-1)
    return jnp.transpose(inp, (0, 3, 1, 2))


if __name__ == "__main__":
    key = jax.random.PRNGKey(0)
    kx, kp = jax.random.split(key)
    N, C, H, W = 2, 4, 16, 16
    x = jax.random.normal(kx, (N, C, H, W), jnp.float32)
    params = init_dam_params(kp, C, n_dam_blocks=2)

    fwd = jax.jit(dam_forward)
    out = jax.block_until_ready(fwd(x, params))

    assert out.shape == (N, C, H, W), out.shape
    assert bool(jnp.all(jnp.isfinite(out)))

    ref = jax.block_until_ready(jax.jit(dam_reference)(x, params))
    err = float(jnp.max(jnp.abs(out - ref)))
    assert err < 1e-1, f"max abs err vs f32 reference: {err}"   # bf16 activations
    print("KERNEL_OK")
</pallas_src>

<mosaic_0001>
module attributes {stable_mosaic.version = 11 : i64} {
  func.func @dam_block_kernel(%arg0: i32, %arg1: memref<1x16x64xbf16, #tpu.memory_space<vmem>>, %arg2: memref<3x64x64xbf16, #tpu.memory_space<vmem>>, %arg3: memref<1x64xf32, #tpu.memory_space<vmem>>, %arg4: memref<64x2xf32, #tpu.memory_space<vmem>>, %arg5: memref<1x2xf32, #tpu.memory_space<vmem>>, %arg6: memref<1xf32, #tpu.memory_space<smem>>, %arg7: memref<2x2xf32, #tpu.memory_space<vmem>>, %arg8: memref<2x64xf32, #tpu.memory_space<vmem>>, %arg9: memref<64x16xf32, #tpu.memory_space<vmem>>, %arg10: memref<7x16x16xf32, #tpu.memory_space<vmem>>, %arg11: memref<1xf32, #tpu.memory_space<smem>>, %arg12: memref<1xf32, #tpu.memory_space<smem>>, %arg13: memref<7x16x16xf32, #tpu.memory_space<vmem>>, %arg14: memref<1xf32, #tpu.memory_space<smem>>, %arg15: memref<16x64xf32, #tpu.memory_space<vmem>>, %arg16: memref<1x16x64xbf16, #tpu.memory_space<vmem>>, %arg17: memref<18x64xbf16, #tpu.memory_space<vmem>>, %arg18: memref<22x16xf32, #tpu.memory_space<vmem>>, %arg19: memref<28x16xf32, #tpu.memory_space<vmem>>) attributes {dimension_semantics = [#tpu.dimension_semantics<parallel>], iteration_bounds = array<i64: 2>, scalar_prefetch = 0 : i64, scratch_operands = 3 : i64, tpu.core_type = #tpu.core_type<tc>, window_params = [{transform_indices = @transform_0, window_bounds = array<i64: 1, 16, 64>}, {pipeline_mode = #tpu.pipeline_mode<synchronous>, transform_indices = @transform_1, window_bounds = array<i64: 3, 64, 64>}, {pipeline_mode = #tpu.pipeline_mode<synchronous>, transform_indices = @transform_2, window_bounds = array<i64: 1, 64>}, {pipeline_mode = #tpu.pipeline_mode<synchronous>, transform_indices = @transform_3, window_bounds = array<i64: 64, 2>}, {pipeline_mode = #tpu.pipeline_mode<synchronous>, transform_indices = @transform_4, window_bounds = array<i64: 1, 2>}, {transform_indices = @transform_5, window_bounds = array<i64: 1>}, {pipeline_mode = #tpu.pipeline_mode<synchronous>, transform_indices = @transform_6, window_bounds = array<i64: 2, 2>}, {pipeline_mode = #tpu.pipeline_mode<synchronous>, transform_indices = @transform_7, window_bounds = array<i64: 2, 64>}, {pipeline_mode = #tpu.pipeline_mode<synchronous>, transform_indices = @transform_8, window_bounds = array<i64: 64, 16>}, {pipeline_mode = #tpu.pipeline_mode<synchronous>, transform_indices = @transform_9, window_bounds = array<i64: 7, 16, 16>}, {transform_indices = @transform_10, window_bounds = array<i64: 1>}, {transform_indices = @transform_11, window_bounds = array<i64: 1>}, {pipeline_mode = #tpu.pipeline_mode<synchronous>, transform_indices = @transform_12, window_bounds = array<i64: 7, 16, 16>}, {transform_indices = @transform_13, window_bounds = array<i64: 1>}, {pipeline_mode = #tpu.pipeline_mode<synchronous>, transform_indices = @transform_14, window_bounds = array<i64: 16, 64>}, {transform_indices = @transform_15, window_bounds = array<i64: 1, 16, 64>}]} {
    %cst = arith.constant 0.000000e+00 : bf16
    %0 = vector.broadcast %cst : bf16 to vector<1x64xbf16>
    %c0 = arith.constant 0 : index
    %c0_0 = arith.constant 0 : index
    %1 = vector.load %arg17[%c0, %c0_0] : memref<18x64xbf16, #tpu.memory_space<vmem>>, vector<1x64xbf16>
    tpu.vector_store %arg17[%c0, %c0_0], %0 {strides = array<i32>} : memref<18x64xbf16, #tpu.memory_space<vmem>>, vector<1x64xbf16>,
    %cst_1 = arith.constant 0.000000e+00 : bf16
    %2 = vector.broadcast %cst_1 : bf16 to vector<1x64xbf16>
    %c17 = arith.constant 17 : index
    %c0_2 = arith.constant 0 : index
    %3 = vector.load %arg17[%c17, %c0_2] : memref<18x64xbf16, #tpu.memory_space<vmem>>, vector<1x64xbf16>
    tpu.vector_store %arg17[%c17, %c0_2], %2 {strides = array<i32>} : memref<18x64xbf16, #tpu.memory_space<vmem>>, vector<1x64xbf16>,
    %c0_3 = arith.constant 0 : index
    %c0_4 = arith.constant 0 : index
    %c0_5 = arith.constant 0 : index
    %4 = vector.load %arg1[%c0_3, %c0_4, %c0_5] : memref<1x16x64xbf16, #tpu.memory_space<vmem>>, vector<1x16x64xbf16>
    %5 = vector.shape_cast %4 : vector<1x16x64xbf16> to vector<16x64xbf16>
    %c1 = arith.constant 1 : index
    %c0_6 = arith.constant 0 : index
    %6 = vector.load %arg17[%c1, %c0_6] : memref<18x64xbf16, #tpu.memory_space<vmem>>, vector<16x64xbf16>
    tpu.vector_store %arg17[%c1, %c0_6], %5 {strides = array<i32>} : memref<18x64xbf16, #tpu.memory_space<vmem>>, vector<16x64xbf16>,
    %cst_7 = arith.constant 0.000000e+00 : f32
    %7 = vector.broadcast %cst_7 : f32 to vector<16x64xf32>
    %c0_8 = arith.constant 0 : index
    %c0_9 = arith.constant 0 : index
    %8 = vector.load %arg17[%c0_8, %c0_9] : memref<18x64xbf16, #tpu.memory_space<vmem>>, vector<16x64xbf16>
    %c0_10 = arith.constant 0 : index
    %c0_11 = arith.constant 0 : index
    %c0_12 = arith.constant 0 : index
    %9 = vector.load %arg2[%c0_10, %c0_11, %c0_12] : memref<3x64x64xbf16, #tpu.memory_space<vmem>>, vector<1x64x64xbf16>
    %10 = vector.shape_cast %9 : vector<1x64x64xbf16> to vector<64x64xbf16>
    %cst_13 = arith.constant dense<0.000000e+00> : vector<16x64xf32>
    %11 = tpu.matmul %8, %10, %cst_13 {dimension_numbers = #tpu.dot_dimension_numbers<[1], [0], [0], [1], [0, 0, 1, 1], [], []>} : vector<16x64xbf16>, vector<64x64xbf16>, vector<16x64xf32> -> vector<16x64xf32>
    %12 = arith.addf %7, %11 : vector<16x64xf32>
    %c1_14 = arith.constant 1 : index
    %c0_15 = arith.constant 0 : index
    %13 = vector.load %arg17[%c1_14, %c0_15] : memref<18x64xbf16, #tpu.memory_space<vmem>>, vector<16x64xbf16>
    %c1_16 = arith.constant 1 : index
    %c0_17 = arith.constant 0 : index
    %c0_18 = arith.constant 0 : index
    %14 = vector.load %arg2[%c1_16, %c0_17, %c0_18] : memref<3x64x64xbf16, #tpu.memory_space<vmem>>, vector<1x64x64xbf16>
    %15 = vector.shape_cast %14 : vector<1x64x64xbf16> to vector<64x64xbf16>
    %cst_19 = arith.constant dense<0.000000e+00> : vector<16x64xf32>
    %16 = tpu.matmul %13, %15, %cst_19 {dimension_numbers = #tpu.dot_dimension_numbers<[1], [0], [0], [1], [0, 0, 1, 1], [], []>} : vector<16x64xbf16>, vector<64x64xbf16>, vector<16x64xf32> -> vector<16x64xf32>
    %17 = arith.addf %12, %16 : vector<16x64xf32>
    %c2 = arith.constant 2 : index
    %c0_20 = arith.constant 0 : index
    %18 = vector.load %arg17[%c2, %c0_20] : memref<18x64xbf16, #tpu.memory_space<vmem>>, vector<16x64xbf16>
    %c2_21 = arith.constant 2 : index
    %c0_22 = arith.constant 0 : index
    %c0_23 = arith.constant 0 : index
    %19 = vector.load %arg2[%c2_21, %c0_22, %c0_23] : memref<3x64x64xbf16, #tpu.memory_space<vmem>>, vector<1x64x64xbf16>
    %20 = vector.shape_cast %19 : vector<1x64x64xbf16> to vector<64x64xbf16>
    %cst_24 = arith.constant dense<0.000000e+00> : vector<16x64xf32>
    %21 = tpu.matmul %18, %20, %cst_24 {dimension_numbers = #tpu.dot_dimension_numbers<[1], [0], [0], [1], [0, 0, 1, 1], [], []>} : vector<16x64xbf16>, vector<64x64xbf16>, vector<16x64xf32> -> vector<16x64xf32>
    %22 = arith.addf %17, %21 : vector<16x64xf32>
    %c0_25 = arith.constant 0 : index
    %c0_26 = arith.constant 0 : index
    %23 = vector.load %arg3[%c0_25, %c0_26] : memref<1x64xf32, #tpu.memory_space<vmem>>, vector<1x64xf32>
    %24 = vector.broadcast %23 : vector<1x64xf32> to vector<16x64xf32>
    %25 = arith.addf %22, %24 : vector<16x64xf32>
    %cst_27 = arith.constant dense<0.000000e+00> : vector<64xf32>
    %26 = vector.multi_reduction <add>, %25, %cst_27 [0] : vector<16x64xf32> to vector<64xf32>
    %27 = vector.shape_cast %26 : vector<64xf32> to vector<1x64xf32>
    %c0_28 = arith.constant 0 : index
    %c0_29 = arith.constant 0 : index
    %28 = vector.load %arg4[%c0_28, %c0_29] : memref<64x2xf32, #tpu.memory_space<vmem>>, vector<64x2xf32>
    %cst_30 = arith.constant dense<0.000000e+00> : vector<1x2xf32>
    %29 = tpu.matmul %27, %28, %cst_30 {dimension_numbers = #tpu.dot_dimension_numbers<[1], [0], [0], [1], [0, 0, 1, 1], [], []>} : vector<1x64xf32>, vector<64x2xf32>, vector<1x2xf32> -> vector<1x2xf32>
    %c0_31 = arith.constant 0 : index
    %c0_32 = arith.constant 0 : index
    %30 = vector.load %arg5[%c0_31, %c0_32] : memref<1x2xf32, #tpu.memory_space<vmem>>, vector<1x2xf32>
    %31 = arith.addf %29, %30 : vector<1x2xf32>
    %cst_33 = arith.constant 0.000000e+00 : f32
    %32 = vector.broadcast %cst_33 : f32 to vector<1x2xf32>
    %33 = arith.cmpf oge, %31, %32 : vector<1x2xf32>
    %c0_34 = arith.constant 0 : index
    %34 = memref.load %arg6[%c0_34] : memref<1xf32, #tpu.memory_space<smem>>
    %35 = vector.broadcast %34 : f32 to vector<1x2xf32>
    %36 = arith.mulf %35, %31 : vector<1x2xf32>
    %37 = arith.select %33, %31, %36 : vector<1x2xi1>, vector<1x2xf32>
    %c0_35 = arith.constant 0 : index
    %c0_36 = arith.constant 0 : index
    %38 = vector.load %arg7[%c0_35, %c0_36] : memref<2x2xf32, #tpu.memory_space<vmem>>, vector<2x2xf32>
    %cst_37 = arith.constant dense<0.000000e+00> : vector<1x2xf32>
    %39 = tpu.matmul %37, %38, %cst_37 {dimension_numbers = #tpu.dot_dimension_numbers<[1], [0], [0], [1], [0, 0, 1, 1], [], []>} : vector<1x2xf32>, vector<2x2xf32>, vector<1x2xf32> -> vector<1x2xf32>
    %40 = arith.negf %39 : vector<1x2xf32>
    %41 = math.exp %40 : vector<1x2xf32>
    %cst_38 = arith.constant 1.000000e+00 : f32
    %42 = vector.broadcast %cst_38 : f32 to vector<1x2xf32>
    %43 = arith.addf %42, %41 : vector<1x2xf32>
    %44 = arith.divf %42, %43 : vector<1x2xf32>
    %c0_39 = arith.constant 0 : index
    %c0_40 = arith.constant 0 : index
    %45 = vector.load %arg8[%c0_39, %c0_40] : memref<2x64xf32, #tpu.memory_space<vmem>>, vector<2x64xf32>
    %cst_41 = arith.constant dense<0.000000e+00> : vector<1x64xf32>
    %46 = tpu.matmul %44, %45, %cst_41 {dimension_numbers = #tpu.dot_dimension_numbers<[1], [0], [0], [1], [0, 0, 1, 1], [], []>} : vector<1x2xf32>, vector<2x64xf32>, vector<1x64xf32> -> vector<1x64xf32>
    %c0_42 = arith.constant 0 : index
    %c0_43 = arith.constant 0 : index
    %47 = vector.load %arg9[%c0_42, %c0_43] : memref<64x16xf32, #tpu.memory_space<vmem>>, vector<64x16xf32>
    %cst_44 = arith.constant dense<0.000000e+00> : vector<16x16xf32>
    %48 = tpu.matmul %25, %47, %cst_44 {dimension_numbers = #tpu.dot_dimension_numbers<[1], [0], [0], [1], [0, 0, 1, 1], [], []>} : vector<16x64xf32>, vector<64x16xf32>, vector<16x16xf32> -> vector<16x16xf32>
    %cst_45 = arith.constant 0.000000e+00 : f32
    %49 = vector.broadcast %cst_45 : f32 to vector<3x16xf32>
    %c0_46 = arith.constant 0 : index
    %c0_47 = arith.constant 0 : index
    %50 = vector.load %arg18[%c0_46, %c0_47] : memref<22x16xf32, #tpu.memory_space<vmem>>, vector<3x16xf32>
    tpu.vector_store %arg18[%c0_46, %c0_47], %49 {strides = array<i32>} : memref<22x16xf32, #tpu.memory_space<vmem>>, vector<3x16xf32>,
    %cst_48 = arith.constant 0.000000e+00 : f32
    %51 = vector.broadcast %cst_48 : f32 to vector<3x16xf32>
    %c19 = arith.constant 19 : index
    %c0_49 = arith.constant 0 : index
    %52 = vector.load %arg18[%c19, %c0_49] : memref<22x16xf32, #tpu.memory_space<vmem>>, vector<3x16xf32>
    tpu.vector_store %arg18[%c19, %c0_49], %51 {strides = array<i32>} : memref<22x16xf32, #tpu.memory_space<vmem>>, vector<3x16xf32>,
    %c3 = arith.constant 3 : index
    %c0_50 = arith.constant 0 : index
    %53 = vector.load %arg18[%c3, %c0_50] : memref<22x16xf32, #tpu.memory_space<vmem>>, vector<16x16xf32>
    tpu.vector_store %arg18[%c3, %c0_50], %48 {strides = array<i32>} : memref<22x16xf32, #tpu.memory_space<vmem>>, vector<16x16xf32>,
    %cst_51 = arith.constant 0.000000e+00 : f32
    %54 = vector.broadcast %cst_51 : f32 to vector<16x16xf32>
    %c0_52 = arith.constant 0 : index
    %c0_53 = arith.constant 0 : index
    %55 = vector.load %arg18[%c0_52, %c0_53] : memref<22x16xf32, #tpu.memory_space<vmem>>, vector<16x16xf32>
    %c0_54 = arith.constant 0 : index
    %c0_55 = arith.constant 0 : index
    %c0_56 = arith.constant 0 : index
    %56 = vector.load %arg10[%c0_54, %c0_55, %c0_56] : memref<7x16x16xf32, #tpu.memory_space<vmem>>, vector<1x16x16xf32>
    %57 = vector.shape_cast %56 : vector<1x16x16xf32> to vector<16x16xf32>
    %cst_57 = arith.constant dense<0.000000e+00> : vector<16x16xf32>
    %58 = tpu.matmul %55, %57, %cst_57 {dimension_numbers = #tpu.dot_dimension_numbers<[1], [0], [0], [1], [0, 0, 1, 1], [], []>} : vector<16x16xf32>, vector<16x16xf32>, vector<16x16xf32> -> vector<16x16xf32>
    %59 = arith.addf %54, %58 : vector<16x16xf32>
    %c1_58 = arith.constant 1 : index
    %c0_59 = arith.constant 0 : index
    %60 = vector.load %arg18[%c1_58, %c0_59] : memref<22x16xf32, #tpu.memory_space<vmem>>, vector<16x16xf32>
    %c1_60 = arith.constant 1 : index
    %c0_61 = arith.constant 0 : index
    %c0_62 = arith.constant 0 : index
    %61 = vector.load %arg10[%c1_60, %c0_61, %c0_62] : memref<7x16x16xf32, #tpu.memory_space<vmem>>, vector<1x16x16xf32>
    %62 = vector.shape_cast %61 : vector<1x16x16xf32> to vector<16x16xf32>
    %cst_63 = arith.constant dense<0.000000e+00> : vector<16x16xf32>
    %63 = tpu.matmul %60, %62, %cst_63 {dimension_numbers = #tpu.dot_dimension_numbers<[1], [0], [0], [1], [0, 0, 1, 1], [], []>} : vector<16x16xf32>, vector<16x16xf32>, vector<16x16xf32> -> vector<16x16xf32>
    %64 = arith.addf %59, %63 : vector<16x16xf32>
    %c2_64 = arith.constant 2 : index
    %c0_65 = arith.constant 0 : index
    %65 = vector.load %arg18[%c2_64, %c0_65] : memref<22x16xf32, #tpu.memory_space<vmem>>, vector<16x16xf32>
    %c2_66 = arith.constant 2 : index
    %c0_67 = arith.constant 0 : index
    %c0_68 = arith.constant 0 : index
    %66 = vector.load %arg10[%c2_66, %c0_67, %c0_68] : memref<7x16x16xf32, #tpu.memory_space<vmem>>, vector<1x16x16xf32>
    %67 = vector.shape_cast %66 : vector<1x16x16xf32> to vector<16x16xf32>
    %cst_69 = arith.constant dense<0.000000e+00> : vector<16x16xf32>
    %68 = tpu.matmul %65, %67, %cst_69 {dimension_numbers = #tpu.dot_dimension_numbers<[1], [0], [0], [1], [0, 0, 1, 1], [], []>} : vector<16x16xf32>, vector<16x16xf32>, vector<16x16xf32> -> vector<16x16xf32>
    %69 = arith.addf %64, %68 : vector<16x16xf32>
    %c3_70 = arith.constant 3 : index
    %c0_71 = arith.constant 0 : index
    %70 = vector.load %arg18[%c3_70, %c0_71] : memref<22x16xf32, #tpu.memory_space<vmem>>, vector<16x16xf32>
    %c3_72 = arith.constant 3 : index
    %c0_73 = arith.constant 0 : index
    %c0_74 = arith.constant 0 : index
    %71 = vector.load %arg10[%c3_72, %c0_73, %c0_74] : memref<7x16x16xf32, #tpu.memory_space<vmem>>, vector<1x16x16xf32>
    %72 = vector.shape_cast %71 : vector<1x16x16xf32> to vector<16x16xf32>
    %cst_75 = arith.constant dense<0.000000e+00> : vector<16x16xf32>
    %73 = tpu.matmul %70, %72, %cst_75 {dimension_numbers = #tpu.dot_dimension_numbers<[1], [0], [0], [1], [0, 0, 1, 1], [], []>} : vector<16x16xf32>, vector<16x16xf32>, vector<16x16xf32> -> vector<16x16xf32>
    %74 = arith.addf %69, %73 : vector<16x16xf32>
    %c4 = arith.constant 4 : index
    %c0_76 = arith.constant 0 : index
    %75 = vector.load %arg18[%c4, %c0_76] : memref<22x16xf32, #tpu.memory_space<vmem>>, vector<16x16xf32>
    %c4_77 = arith.constant 4 : index
    %c0_78 = arith.constant 0 : index
    %c0_79 = arith.constant 0 : index
    %76 = vector.load %arg10[%c4_77, %c0_78, %c0_79] : memref<7x16x16xf32, #tpu.memory_space<vmem>>, vector<1x16x16xf32>
    %77 = vector.shape_cast %76 : vector<1x16x16xf32> to vector<16x16xf32>
    %cst_80 = arith.constant dense<0.000000e+00> : vector<16x16xf32>
    %78 = tpu.matmul %75, %77, %cst_80 {dimension_numbers = #tpu.dot_dimension_numbers<[1], [0], [0], [1], [0, 0, 1, 1], [], []>} : vector<16x16xf32>, vector<16x16xf32>, vector<16x16xf32> -> vector<16x16xf32>
    %79 = arith.addf %74, %78 : vector<16x16xf32>
    %c5 = arith.constant 5 : index
    %c0_81 = arith.constant 0 : index
    %80 = vector.load %arg18[%c5, %c0_81] : memref<22x16xf32, #tpu.memory_space<vmem>>, vector<16x16xf32>
    %c5_82 = arith.constant 5 : index
    %c0_83 = arith.constant 0 : index
    %c0_84 = arith.constant 0 : index
    %81 = vector.load %arg10[%c5_82, %c0_83, %c0_84] : memref<7x16x16xf32, #tpu.memory_space<vmem>>, vector<1x16x16xf32>
    %82 = vector.shape_cast %81 : vector<1x16x16xf32> to vector<16x16xf32>
    %cst_85 = arith.constant dense<0.000000e+00> : vector<16x16xf32>
    %83 = tpu.matmul %80, %82, %cst_85 {dimension_numbers = #tpu.dot_dimension_numbers<[1], [0], [0], [1], [0, 0, 1, 1], [], []>} : vector<16x16xf32>, vector<16x16xf32>, vector<16x16xf32> -> vector<16x16xf32>
    %84 = arith.addf %79, %83 : vector<16x16xf32>
    %c6 = arith.constant 6 : index
    %c0_86 = arith.constant 0 : index
    %85 = vector.load %arg18[%c6, %c0_86] : memref<22x16xf32, #tpu.memory_space<vmem>>, vector<16x16xf32>
    %c6_87 = arith.constant 6 : index
    %c0_88 = arith.constant 0 : index
    %c0_89 = arith.constant 0 : index
    %86 = vector.load %arg10[%c6_87, %c0_88, %c0_89] : memref<7x16x16xf32, #tpu.memory_space<vmem>>, vector<1x16x16xf32>
    %87 = vector.shape_cast %86 : vector<1x16x16xf32> to vector<16x16xf32>
    %cst_90 = arith.constant dense<0.000000e+00> : vector<16x16xf32>
    %88 = tpu.matmul %85, %87, %cst_90 {dimension_numbers = #tpu.dot_dimension_numbers<[1], [0], [0], [1], [0, 0, 1, 1], [], []>} : vector<16x16xf32>, vector<16x16xf32>, vector<16x16xf32> -> vector<16x16xf32>
    %89 = arith.addf %84, %88 : vector<16x16xf32>
    %c0_91 = arith.constant 0 : index
    %90 = memref.load %arg11[%c0_91] : memref<1xf32, #tpu.memory_space<smem>>
    %91 = vector.broadcast %90 : f32 to vector<16x16xf32>
    %92 = arith.addf %89, %91 : vector<16x16xf32>
    %cst_92 = arith.constant 0.000000e+00 : f32
    %93 = vector.broadcast %cst_92 : f32 to vector<16x16xf32>
    %94 = arith.cmpf oge, %92, %93 : vector<16x16xf32>
    %c0_93 = arith.constant 0 : index
    %95 = memref.load %arg12[%c0_93] : memref<1xf32, #tpu.memory_space<smem>>
    %96 = vector.broadcast %95 : f32 to vector<16x16xf32>
    %97 = arith.mulf %96, %92 : vector<16x16xf32>
    %98 = arith.select %94, %92, %97 : vector<16x16xi1>, vector<16x16xf32>
    %cst_94 = arith.constant 0.000000e+00 : f32
    %99 = vector.broadcast %cst_94 : f32 to vector<6x16xf32>
    %c0_95 = arith.constant 0 : index
    %c0_96 = arith.constant 0 : index
    %100 = vector.load %arg19[%c0_95, %c0_96] : memref<28x16xf32, #tpu.memory_space<vmem>>, vector<6x16xf32>
    tpu.vector_store %arg19[%c0_95, %c0_96], %99 {strides = array<i32>} : memref<28x16xf32, #tpu.memory_space<vmem>>, vector<6x16xf32>,
    %cst_97 = arith.constant 0.000000e+00 : f32
    %101 = vector.broadcast %cst_97 : f32 to vector<6x16xf32>
    %c22 = arith.constant 22 : index
    %c0_98 = arith.constant 0 : index
    %102 = vector.load %arg19[%c22, %c0_98] : memref<28x16xf32, #tpu.memory_space<vmem>>, vector<6x16xf32>
    tpu.vector_store %arg19[%c22, %c0_98], %101 {strides = array<i32>} : memref<28x16xf32, #tpu.memory_space<vmem>>, vector<6x16xf32>,
    %c6_99 = arith.constant 6 : index
    %c0_100 = arith.constant 0 : index
    %103 = vector.load %arg19[%c6_99, %c0_100] : memref<28x16xf32, #tpu.memory_space<vmem>>, vector<16x16xf32>
    tpu.vector_store %arg19[%c6_99, %c0_100], %98 {strides = array<i32>} : memref<28x16xf32, #tpu.memory_space<vmem>>, vector<16x16xf32>,
    %cst_101 = arith.constant 0.000000e+00 : f32
    %104 = vector.broadcast %cst_101 : f32 to vector<16x16xf32>
    %c0_102 = arith.constant 0 : index
    %c0_103 = arith.constant 0 : index
    %105 = vector.load %arg19[%c0_102, %c0_103] : memref<28x16xf32, #tpu.memory_space<vmem>>, vector<16x16xf32>
    %c0_104 = arith.constant 0 : index
    %c0_105 = arith.constant 0 : index
    %c0_106 = arith.constant 0 : index
    %106 = vector.load %arg13[%c0_104, %c0_105, %c0_106] : memref<7x16x16xf32, #tpu.memory_space<vmem>>, vector<1x16x16xf32>
    %107 = vector.shape_cast %106 : vector<1x16x16xf32> to vector<16x16xf32>
    %cst_107 = arith.constant dense<0.000000e+00> : vector<16x16xf32>
    %108 = tpu.matmul %105, %107, %cst_107 {dimension_numbers = #tpu.dot_dimension_numbers<[1], [0], [0], [1], [0, 0, 1, 1], [], []>} : vector<16x16xf32>, vector<16x16xf32>, vector<16x16xf32> -> vector<16x16xf32>
    %109 = arith.addf %104, %108 : vector<16x16xf32>
    %c2_108 = arith.constant 2 : index
    %c0_109 = arith.constant 0 : index
    %110 = vector.load %arg19[%c2_108, %c0_109] : memref<28x16xf32, #tpu.memory_space<vmem>>, vector<16x16xf32>
    %c1_110 = arith.constant 1 : index
    %c0_111 = arith.constant 0 : index
    %c0_112 = arith.constant 0 : index
    %111 = vector.load %arg13[%c1_110, %c0_111, %c0_112] : memref<7x16x16xf32, #tpu.memory_space<vmem>>, vector<1x16x16xf32>
    %112 = vector.shape_cast %111 : vector<1x16x16xf32> to vector<16x16xf32>
    %cst_113 = arith.constant dense<0.000000e+00> : vector<16x16xf32>
    %113 = tpu.matmul %110, %112, %cst_113 {dimension_numbers = #tpu.dot_dimension_numbers<[1], [0], [0], [1], [0, 0, 1, 1], [], []>} : vector<16x16xf32>, vector<16x16xf32>, vector<16x16xf32> -> vector<16x16xf32>
    %114 = arith.addf %109, %113 : vector<16x16xf32>
    %c4_114 = arith.constant 4 : index
    %c0_115 = arith.constant 0 : index
    %115 = vector.load %arg19[%c4_114, %c0_115] : memref<28x16xf32, #tpu.memory_space<vmem>>, vector<16x16xf32>
    %c2_116 = arith.constant 2 : index
    %c0_117 = arith.constant 0 : index
    %c0_118 = arith.constant 0 : index
    %116 = vector.load %arg13[%c2_116, %c0_117, %c0_118] : memref<7x16x16xf32, #tpu.memory_space<vmem>>, vector<1x16x16xf32>
    %117 = vector.shape_cast %116 : vector<1x16x16xf32> to vector<16x16xf32>
    %cst_119 = arith.constant dense<0.000000e+00> : vector<16x16xf32>
    %118 = tpu.matmul %115, %117, %cst_119 {dimension_numbers = #tpu.dot_dimension_numbers<[1], [0], [0], [1], [0, 0, 1, 1], [], []>} : vector<16x16xf32>, vector<16x16xf32>, vector<16x16xf32> -> vector<16x16xf32>
    %119 = arith.addf %114, %118 : vector<16x16xf32>
    %c6_120 = arith.constant 6 : index
    %c0_121 = arith.constant 0 : index
    %120 = vector.load %arg19[%c6_120, %c0_121] : memref<28x16xf32, #tpu.memory_space<vmem>>, vector<16x16xf32>
    %c3_122 = arith.constant 3 : index
    %c0_123 = arith.constant 0 : index
    %c0_124 = arith.constant 0 : index
    %121 = vector.load %arg13[%c3_122, %c0_123, %c0_124] : memref<7x16x16xf32, #tpu.memory_space<vmem>>, vector<1x16x16xf32>
    %122 = vector.shape_cast %121 : vector<1x16x16xf32> to vector<16x16xf32>
    %cst_125 = arith.constant dense<0.000000e+00> : vector<16x16xf32>
    %123 = tpu.matmul %120, %122, %cst_125 {dimension_numbers = #tpu.dot_dimension_numbers<[1], [0], [0], [1], [0, 0, 1, 1], [], []>} : vector<16x16xf32>, vector<16x16xf32>, vector<16x16xf32> -> vector<16x16xf32>
    %124 = arith.addf %119, %123 : vector<16x16xf32>
    %c8 = arith.constant 8 : index
    %c0_126 = arith.constant 0 : index
    %125 = vector.load %arg19[%c8, %c0_126] : memref<28x16xf32, #tpu.memory_space<vmem>>, vector<16x16xf32>
    %c4_127 = arith.constant 4 : index
    %c0_128 = arith.constant 0 : index
    %c0_129 = arith.constant 0 : index
    %126 = vector.load %arg13[%c4_127, %c0_128, %c0_129] : memref<7x16x16xf32, #tpu.memory_space<vmem>>, vector<1x16x16xf32>
    %127 = vector.shape_cast %126 : vector<1x16x16xf32> to vector<16x16xf32>
    %cst_130 = arith.constant dense<0.000000e+00> : vector<16x16xf32>
    %128 = tpu.matmul %125, %127, %cst_130 {dimension_numbers = #tpu.dot_dimension_numbers<[1], [0], [0], [1], [0, 0, 1, 1], [], []>} : vector<16x16xf32>, vector<16x16xf32>, vector<16x16xf32> -> vector<16x16xf32>
    %129 = arith.addf %124, %128 : vector<16x16xf32>
    %c10 = arith.constant 10 : index
    %c0_131 = arith.constant 0 : index
    %130 = vector.load %arg19[%c10, %c0_131] : memref<28x16xf32, #tpu.memory_space<vmem>>, vector<16x16xf32>
    %c5_132 = arith.constant 5 : index
    %c0_133 = arith.constant 0 : index
    %c0_134 = arith.constant 0 : index
    %131 = vector.load %arg13[%c5_132, %c0_133, %c0_134] : memref<7x16x16xf32, #tpu.memory_space<vmem>>, vector<1x16x16xf32>
    %132 = vector.shape_cast %131 : vector<1x16x16xf32> to vector<16x16xf32>
    %cst_135 = arith.constant dense<0.000000e+00> : vector<16x16xf32>
    %133 = tpu.matmul %130, %132, %cst_135 {dimension_numbers = #tpu.dot_dimension_numbers<[1], [0], [0], [1], [0, 0, 1, 1], [], []>} : vector<16x16xf32>, vector<16x16xf32>, vector<16x16xf32> -> vector<16x16xf32>
    %134 = arith.addf %129, %133 : vector<16x16xf32>
    %c12 = arith.constant 12 : index
    %c0_136 = arith.constant 0 : index
    %135 = vector.load %arg19[%c12, %c0_136] : memref<28x16xf32, #tpu.memory_space<vmem>>, vector<16x16xf32>
    %c6_137 = arith.constant 6 : index
    %c0_138 = arith.constant 0 : index
    %c0_139 = arith.constant 0 : index
    %136 = vector.load %arg13[%c6_137, %c0_138, %c0_139] : memref<7x16x16xf32, #tpu.memory_space<vmem>>, vector<1x16x16xf32>
    %137 = vector.shape_cast %136 : vector<1x16x16xf32> to vector<16x16xf32>
    %cst_140 = arith.constant dense<0.000000e+00> : vector<16x16xf32>
    %138 = tpu.matmul %135, %137, %cst_140 {dimension_numbers = #tpu.dot_dimension_numbers<[1], [0], [0], [1], [0, 0, 1, 1], [], []>} : vector<16x16xf32>, vector<16x16xf32>, vector<16x16xf32> -> vector<16x16xf32>
    %139 = arith.addf %134, %138 : vector<16x16xf32>
    %c0_141 = arith.constant 0 : index
    %140 = memref.load %arg14[%c0_141] : memref<1xf32, #tpu.memory_space<smem>>
    %141 = vector.broadcast %140 : f32 to vector<16x16xf32>
    %142 = arith.addf %139, %141 : vector<16x16xf32>
    %143 = arith.negf %142 : vector<16x16xf32>
    %144 = math.exp %143 : vector<16x16xf32>
    %cst_142 = arith.constant 1.000000e+00 : f32
    %145 = vector.broadcast %cst_142 : f32 to vector<16x16xf32>
    %146 = arith.addf %145, %144 : vector<16x16xf32>
    %147 = arith.divf %145, %146 : vector<16x16xf32>
    %c0_143 = arith.constant 0 : index
    %c0_144 = arith.constant 0 : index
    %148 = vector.load %arg15[%c0_143, %c0_144] : memref<16x64xf32, #tpu.memory_space<vmem>>, vector<16x64xf32>
    %cst_145 = arith.constant dense<0.000000e+00> : vector<16x64xf32>
    %149 = tpu.matmul %147, %148, %cst_145 {dimension_numbers = #tpu.dot_dimension_numbers<[1], [0], [0], [1], [0, 0, 1, 1], [], []>} : vector<16x16xf32>, vector<16x64xf32>, vector<16x64xf32> -> vector<16x64xf32>
    %cst_146 = arith.constant 1.000000e+00 : f32
    %150 = vector.broadcast %cst_146 : f32 to vector<1x64xf32>
    %151 = arith.addf %150, %46 : vector<1x64xf32>
    %152 = vector.broadcast %151 : vector<1x64xf32> to vector<16x64xf32>
    %153 = arith.addf %152, %149 : vector<16x64xf32>
    %154 = arith.mulf %25, %153 : vector<16x64xf32>
    %155 = arith.truncf %154 : vector<16x64xf32> to vector<16x64xbf16>
    %c0_147 = arith.constant 0 : index
    %c0_148 = arith.constant 0 : index
    %c0_149 = arith.constant 0 : index
    %156 = vector.load %arg16[%c0_147, %c0_148, %c0_149] : memref<1x16x64xbf16, #tpu.memory_space<vmem>>, vector<1x16x64xbf16>
    %157 = vector.shape_cast %156 : vector<1x16x64xbf16> to vector<16x64xbf16>
    %158 = vector.shape_cast %155 : vector<16x64xbf16> to vector<1x16x64xbf16>
    tpu.vector_store %arg16[%c0_147, %c0_148, %c0_149], %158 {strides = array<i32>} : memref<1x16x64xbf16, #tpu.memory_space<vmem>>, vector<1x16x64xbf16>,
    return
  }
  func.func @transform_0(%arg0: i32) -> (i32, i32, i32) {
    %c0_i32 = arith.constant 0 : i32
    %c0_i32_0 = arith.constant 0 : i32
    %c0_i32_1 = arith.constant 0 : i32
    return %arg0, %c0_i32, %c0_i32_0 : i32, i32, i32
  }
  func.func @transform_1(%arg0: i32) -> (i32, i32, i32) {
    %c0_i32 = arith.constant 0 : i32
    %c0_i32_0 = arith.constant 0 : i32
    %c0_i32_1 = arith.constant 0 : i32
    %c0_i32_2 = arith.constant 0 : i32
    return %c0_i32, %c0_i32_0, %c0_i32_1 : i32, i32, i32
  }
  func.func @transform_2(%arg0: i32) -> (i32, i32) {
    %c0_i32 = arith.constant 0 : i32
    %c0_i32_0 = arith.constant 0 : i32
    %c0_i32_1 = arith.constant 0 : i32
    return %c0_i32, %c0_i32_0 : i32, i32
  }
  func.func @transform_3(%arg0: i32) -> (i32, i32) {
    %c0_i32 = arith.constant 0 : i32
    %c0_i32_0 = arith.constant 0 : i32
    %c0_i32_1 = arith.constant 0 : i32
    return %c0_i32, %c0_i32_0 : i32, i32
  }
  func.func @transform_4(%arg0: i32) -> (i32, i32) {
    %c0_i32 = arith.constant 0 : i32
    %c0_i32_0 = arith.constant 0 : i32
    %c0_i32_1 = arith.constant 0 : i32
    return %c0_i32, %c0_i32_0 : i32, i32
  }
  func.func @transform_5(%arg0: i32) -> i32 {
    %c0_i32 = arith.constant 0 : i32
    %c0_i32_0 = arith.constant 0 : i32
    return %c0_i32 : i32
  }
  func.func @transform_6(%arg0: i32) -> (i32, i32) {
    %c0_i32 = arith.constant 0 : i32
    %c0_i32_0 = arith.constant 0 : i32
    %c0_i32_1 = arith.constant 0 : i32
    return %c0_i32, %c0_i32_0 : i32, i32
  }
  func.func @transform_7(%arg0: i32) -> (i32, i32) {
    %c0_i32 = arith.constant 0 : i32
    %c0_i32_0 = arith.constant 0 : i32
    %c0_i32_1 = arith.constant 0 : i32
    return %c0_i32, %c0_i32_0 : i32, i32
  }
  func.func @transform_8(%arg0: i32) -> (i32, i32) {
    %c0_i32 = arith.constant 0 : i32
    %c0_i32_0 = arith.constant 0 : i32
    %c0_i32_1 = arith.constant 0 : i32
    return %c0_i32, %c0_i32_0 : i32, i32
  }
  func.func @transform_9(%arg0: i32) -> (i32, i32, i32) {
    %c0_i32 = arith.constant 0 : i32
    %c0_i32_0 = arith.constant 0 : i32
    %c0_i32_1 = arith.constant 0 : i32
    %c0_i32_2 = arith.constant 0 : i32
    return %c0_i32, %c0_i32_0, %c0_i32_1 : i32, i32, i32
  }
  func.func @transform_10(%arg0: i32) -> i32 {
    %c0_i32 = arith.constant 0 : i32
    %c0_i32_0 = arith.constant 0 : i32
    return %c0_i32 : i32
  }
  func.func @transform_11(%arg0: i32) -> i32 {
    %c0_i32 = arith.constant 0 : i32
    %c0_i32_0 = arith.constant 0 : i32
    return %c0_i32 : i32
  }
  func.func @transform_12(%arg0: i32) -> (i32, i32, i32) {
    %c0_i32 = arith.constant 0 : i32
    %c0_i32_0 = arith.constant 0 : i32
    %c0_i32_1 = arith.constant 0 : i32
    %c0_i32_2 = arith.constant 0 : i32
    return %c0_i32, %c0_i32_0, %c0_i32_1 : i32, i32, i32
  }
  func.func @transform_13(%arg0: i32) -> i32 {
    %c0_i32 = arith.constant 0 : i32
    %c0_i32_0 = arith.constant 0 : i32
    return %c0_i32 : i32
  }
  func.func @transform_14(%arg0: i32) -> (i32, i32) {
    %c0_i32 = arith.constant 0 : i32
    %c0_i32_0 = arith.constant 0 : i32
    %c0_i32_1 = arith.constant 0 : i32
    return %c0_i32, %c0_i32_0 : i32, i32
  }
  func.func @transform_15(%arg0: i32) -> (i32, i32, i32) {
    %c0_i32 = arith.constant 0 : i32
    %c0_i32_0 = arith.constant 0 : i32
    %c0_i32_1 = arith.constant 0 : i32
    return %arg0, %c0_i32, %c0_i32_0 : i32, i32, i32
  }
}

module attributes {stable_mosaic.version = 11 : i64} {
  func.func @dam_block_kernel(%arg0: i32, %arg1: memref<1x16x64xbf16, #tpu.memory_space<vmem>>, %arg2: memref<3x64x64xbf16, #tpu.memory_space<vmem>>, %arg3: memref<1x64xf32, #tpu.memory_space<vmem>>, %arg4: memref<64x2xf32, #tpu.memory_space<vmem>>, %arg5: memref<1x2xf32, #tpu.memory_space<vmem>>, %arg6: memref<1xf32, #tpu.memory_space<smem>>, %arg7: memref<2x2xf32, #tpu.memory_space<vmem>>, %arg8: memref<2x64xf32, #tpu.memory_space<vmem>>, %arg9: memref<64x16xf32, #tpu.memory_space<vmem>>, %arg10: memref<7x16x16xf32, #tpu.memory_space<vmem>>, %arg11: memref<1xf32, #tpu.memory_space<smem>>, %arg12: memref<1xf32, #tpu.memory_space<smem>>, %arg13: memref<7x16x16xf32, #tpu.memory_space<vmem>>, %arg14: memref<1xf32, #tpu.memory_space<smem>>, %arg15: memref<16x64xf32, #tpu.memory_space<vmem>>, %arg16: memref<1x16x64xf32, #tpu.memory_space<vmem>>, %arg17: memref<18x64xbf16, #tpu.memory_space<vmem>>, %arg18: memref<22x16xf32, #tpu.memory_space<vmem>>, %arg19: memref<28x16xf32, #tpu.memory_space<vmem>>) attributes {dimension_semantics = [#tpu.dimension_semantics<parallel>], iteration_bounds = array<i64: 2>, scalar_prefetch = 0 : i64, scratch_operands = 3 : i64, tpu.core_type = #tpu.core_type<tc>, window_params = [{transform_indices = @transform_0, window_bounds = array<i64: 1, 16, 64>}, {pipeline_mode = #tpu.pipeline_mode<synchronous>, transform_indices = @transform_1, window_bounds = array<i64: 3, 64, 64>}, {pipeline_mode = #tpu.pipeline_mode<synchronous>, transform_indices = @transform_2, window_bounds = array<i64: 1, 64>}, {pipeline_mode = #tpu.pipeline_mode<synchronous>, transform_indices = @transform_3, window_bounds = array<i64: 64, 2>}, {pipeline_mode = #tpu.pipeline_mode<synchronous>, transform_indices = @transform_4, window_bounds = array<i64: 1, 2>}, {transform_indices = @transform_5, window_bounds = array<i64: 1>}, {pipeline_mode = #tpu.pipeline_mode<synchronous>, transform_indices = @transform_6, window_bounds = array<i64: 2, 2>}, {pipeline_mode = #tpu.pipeline_mode<synchronous>, transform_indices = @transform_7, window_bounds = array<i64: 2, 64>}, {pipeline_mode = #tpu.pipeline_mode<synchronous>, transform_indices = @transform_8, window_bounds = array<i64: 64, 16>}, {pipeline_mode = #tpu.pipeline_mode<synchronous>, transform_indices = @transform_9, window_bounds = array<i64: 7, 16, 16>}, {transform_indices = @transform_10, window_bounds = array<i64: 1>}, {transform_indices = @transform_11, window_bounds = array<i64: 1>}, {pipeline_mode = #tpu.pipeline_mode<synchronous>, transform_indices = @transform_12, window_bounds = array<i64: 7, 16, 16>}, {transform_indices = @transform_13, window_bounds = array<i64: 1>}, {pipeline_mode = #tpu.pipeline_mode<synchronous>, transform_indices = @transform_14, window_bounds = array<i64: 16, 64>}, {transform_indices = @transform_15, window_bounds = array<i64: 1, 16, 64>}]} {
    %cst = arith.constant 0.000000e+00 : bf16
    %0 = vector.broadcast %cst : bf16 to vector<1x64xbf16>
    %c0 = arith.constant 0 : index
    %c0_0 = arith.constant 0 : index
    %1 = vector.load %arg17[%c0, %c0_0] : memref<18x64xbf16, #tpu.memory_space<vmem>>, vector<1x64xbf16>
    tpu.vector_store %arg17[%c0, %c0_0], %0 {strides = array<i32>} : memref<18x64xbf16, #tpu.memory_space<vmem>>, vector<1x64xbf16>,
    %cst_1 = arith.constant 0.000000e+00 : bf16
    %2 = vector.broadcast %cst_1 : bf16 to vector<1x64xbf16>
    %c17 = arith.constant 17 : index
    %c0_2 = arith.constant 0 : index
    %3 = vector.load %arg17[%c17, %c0_2] : memref<18x64xbf16, #tpu.memory_space<vmem>>, vector<1x64xbf16>
    tpu.vector_store %arg17[%c17, %c0_2], %2 {strides = array<i32>} : memref<18x64xbf16, #tpu.memory_space<vmem>>, vector<1x64xbf16>,
    %c0_3 = arith.constant 0 : index
    %c0_4 = arith.constant 0 : index
    %c0_5 = arith.constant 0 : index
    %4 = vector.load %arg1[%c0_3, %c0_4, %c0_5] : memref<1x16x64xbf16, #tpu.memory_space<vmem>>, vector<1x16x64xbf16>
    %5 = vector.shape_cast %4 : vector<1x16x64xbf16> to vector<16x64xbf16>
    %c1 = arith.constant 1 : index
    %c0_6 = arith.constant 0 : index
    %6 = vector.load %arg17[%c1, %c0_6] : memref<18x64xbf16, #tpu.memory_space<vmem>>, vector<16x64xbf16>
    tpu.vector_store %arg17[%c1, %c0_6], %5 {strides = array<i32>} : memref<18x64xbf16, #tpu.memory_space<vmem>>, vector<16x64xbf16>,
    %cst_7 = arith.constant 0.000000e+00 : f32
    %7 = vector.broadcast %cst_7 : f32 to vector<16x64xf32>
    %c0_8 = arith.constant 0 : index
    %c0_9 = arith.constant 0 : index
    %8 = vector.load %arg17[%c0_8, %c0_9] : memref<18x64xbf16, #tpu.memory_space<vmem>>, vector<16x64xbf16>
    %c0_10 = arith.constant 0 : index
    %c0_11 = arith.constant 0 : index
    %c0_12 = arith.constant 0 : index
    %9 = vector.load %arg2[%c0_10, %c0_11, %c0_12] : memref<3x64x64xbf16, #tpu.memory_space<vmem>>, vector<1x64x64xbf16>
    %10 = vector.shape_cast %9 : vector<1x64x64xbf16> to vector<64x64xbf16>
    %cst_13 = arith.constant dense<0.000000e+00> : vector<16x64xf32>
    %11 = tpu.matmul %8, %10, %cst_13 {dimension_numbers = #tpu.dot_dimension_numbers<[1], [0], [0], [1], [0, 0, 1, 1], [], []>} : vector<16x64xbf16>, vector<64x64xbf16>, vector<16x64xf32> -> vector<16x64xf32>
    %12 = arith.addf %7, %11 : vector<16x64xf32>
    %c1_14 = arith.constant 1 : index
    %c0_15 = arith.constant 0 : index
    %13 = vector.load %arg17[%c1_14, %c0_15] : memref<18x64xbf16, #tpu.memory_space<vmem>>, vector<16x64xbf16>
    %c1_16 = arith.constant 1 : index
    %c0_17 = arith.constant 0 : index
    %c0_18 = arith.constant 0 : index
    %14 = vector.load %arg2[%c1_16, %c0_17, %c0_18] : memref<3x64x64xbf16, #tpu.memory_space<vmem>>, vector<1x64x64xbf16>
    %15 = vector.shape_cast %14 : vector<1x64x64xbf16> to vector<64x64xbf16>
    %cst_19 = arith.constant dense<0.000000e+00> : vector<16x64xf32>
    %16 = tpu.matmul %13, %15, %cst_19 {dimension_numbers = #tpu.dot_dimension_numbers<[1], [0], [0], [1], [0, 0, 1, 1], [], []>} : vector<16x64xbf16>, vector<64x64xbf16>, vector<16x64xf32> -> vector<16x64xf32>
    %17 = arith.addf %12, %16 : vector<16x64xf32>
    %c2 = arith.constant 2 : index
    %c0_20 = arith.constant 0 : index
    %18 = vector.load %arg17[%c2, %c0_20] : memref<18x64xbf16, #tpu.memory_space<vmem>>, vector<16x64xbf16>
    %c2_21 = arith.constant 2 : index
    %c0_22 = arith.constant 0 : index
    %c0_23 = arith.constant 0 : index
    %19 = vector.load %arg2[%c2_21, %c0_22, %c0_23] : memref<3x64x64xbf16, #tpu.memory_space<vmem>>, vector<1x64x64xbf16>
    %20 = vector.shape_cast %19 : vector<1x64x64xbf16> to vector<64x64xbf16>
    %cst_24 = arith.constant dense<0.000000e+00> : vector<16x64xf32>
    %21 = tpu.matmul %18, %20, %cst_24 {dimension_numbers = #tpu.dot_dimension_numbers<[1], [0], [0], [1], [0, 0, 1, 1], [], []>} : vector<16x64xbf16>, vector<64x64xbf16>, vector<16x64xf32> -> vector<16x64xf32>
    %22 = arith.addf %17, %21 : vector<16x64xf32>
    %c0_25 = arith.constant 0 : index
    %c0_26 = arith.constant 0 : index
    %23 = vector.load %arg3[%c0_25, %c0_26] : memref<1x64xf32, #tpu.memory_space<vmem>>, vector<1x64xf32>
    %24 = vector.broadcast %23 : vector<1x64xf32> to vector<16x64xf32>
    %25 = arith.addf %22, %24 : vector<16x64xf32>
    %cst_27 = arith.constant dense<0.000000e+00> : vector<64xf32>
    %26 = vector.multi_reduction <add>, %25, %cst_27 [0] : vector<16x64xf32> to vector<64xf32>
    %27 = vector.shape_cast %26 : vector<64xf32> to vector<1x64xf32>
    %c0_28 = arith.constant 0 : index
    %c0_29 = arith.constant 0 : index
    %28 = vector.load %arg4[%c0_28, %c0_29] : memref<64x2xf32, #tpu.memory_space<vmem>>, vector<64x2xf32>
    %cst_30 = arith.constant dense<0.000000e+00> : vector<1x2xf32>
    %29 = tpu.matmul %27, %28, %cst_30 {dimension_numbers = #tpu.dot_dimension_numbers<[1], [0], [0], [1], [0, 0, 1, 1], [], []>} : vector<1x64xf32>, vector<64x2xf32>, vector<1x2xf32> -> vector<1x2xf32>
    %c0_31 = arith.constant 0 : index
    %c0_32 = arith.constant 0 : index
    %30 = vector.load %arg5[%c0_31, %c0_32] : memref<1x2xf32, #tpu.memory_space<vmem>>, vector<1x2xf32>
    %31 = arith.addf %29, %30 : vector<1x2xf32>
    %cst_33 = arith.constant 0.000000e+00 : f32
    %32 = vector.broadcast %cst_33 : f32 to vector<1x2xf32>
    %33 = arith.cmpf oge, %31, %32 : vector<1x2xf32>
    %c0_34 = arith.constant 0 : index
    %34 = memref.load %arg6[%c0_34] : memref<1xf32, #tpu.memory_space<smem>>
    %35 = vector.broadcast %34 : f32 to vector<1x2xf32>
    %36 = arith.mulf %35, %31 : vector<1x2xf32>
    %37 = arith.select %33, %31, %36 : vector<1x2xi1>, vector<1x2xf32>
    %c0_35 = arith.constant 0 : index
    %c0_36 = arith.constant 0 : index
    %38 = vector.load %arg7[%c0_35, %c0_36] : memref<2x2xf32, #tpu.memory_space<vmem>>, vector<2x2xf32>
    %cst_37 = arith.constant dense<0.000000e+00> : vector<1x2xf32>
    %39 = tpu.matmul %37, %38, %cst_37 {dimension_numbers = #tpu.dot_dimension_numbers<[1], [0], [0], [1], [0, 0, 1, 1], [], []>} : vector<1x2xf32>, vector<2x2xf32>, vector<1x2xf32> -> vector<1x2xf32>
    %40 = arith.negf %39 : vector<1x2xf32>
    %41 = math.exp %40 : vector<1x2xf32>
    %cst_38 = arith.constant 1.000000e+00 : f32
    %42 = vector.broadcast %cst_38 : f32 to vector<1x2xf32>
    %43 = arith.addf %42, %41 : vector<1x2xf32>
    %44 = arith.divf %42, %43 : vector<1x2xf32>
    %c0_39 = arith.constant 0 : index
    %c0_40 = arith.constant 0 : index
    %45 = vector.load %arg8[%c0_39, %c0_40] : memref<2x64xf32, #tpu.memory_space<vmem>>, vector<2x64xf32>
    %cst_41 = arith.constant dense<0.000000e+00> : vector<1x64xf32>
    %46 = tpu.matmul %44, %45, %cst_41 {dimension_numbers = #tpu.dot_dimension_numbers<[1], [0], [0], [1], [0, 0, 1, 1], [], []>} : vector<1x2xf32>, vector<2x64xf32>, vector<1x64xf32> -> vector<1x64xf32>
    %c0_42 = arith.constant 0 : index
    %c0_43 = arith.constant 0 : index
    %47 = vector.load %arg9[%c0_42, %c0_43] : memref<64x16xf32, #tpu.memory_space<vmem>>, vector<64x16xf32>
    %cst_44 = arith.constant dense<0.000000e+00> : vector<16x16xf32>
    %48 = tpu.matmul %25, %47, %cst_44 {dimension_numbers = #tpu.dot_dimension_numbers<[1], [0], [0], [1], [0, 0, 1, 1], [], []>} : vector<16x64xf32>, vector<64x16xf32>, vector<16x16xf32> -> vector<16x16xf32>
    %cst_45 = arith.constant 0.000000e+00 : f32
    %49 = vector.broadcast %cst_45 : f32 to vector<3x16xf32>
    %c0_46 = arith.constant 0 : index
    %c0_47 = arith.constant 0 : index
    %50 = vector.load %arg18[%c0_46, %c0_47] : memref<22x16xf32, #tpu.memory_space<vmem>>, vector<3x16xf32>
    tpu.vector_store %arg18[%c0_46, %c0_47], %49 {strides = array<i32>} : memref<22x16xf32, #tpu.memory_space<vmem>>, vector<3x16xf32>,
    %cst_48 = arith.constant 0.000000e+00 : f32
    %51 = vector.broadcast %cst_48 : f32 to vector<3x16xf32>
    %c19 = arith.constant 19 : index
    %c0_49 = arith.constant 0 : index
    %52 = vector.load %arg18[%c19, %c0_49] : memref<22x16xf32, #tpu.memory_space<vmem>>, vector<3x16xf32>
    tpu.vector_store %arg18[%c19, %c0_49], %51 {strides = array<i32>} : memref<22x16xf32, #tpu.memory_space<vmem>>, vector<3x16xf32>,
    %c3 = arith.constant 3 : index
    %c0_50 = arith.constant 0 : index
    %53 = vector.load %arg18[%c3, %c0_50] : memref<22x16xf32, #tpu.memory_space<vmem>>, vector<16x16xf32>
    tpu.vector_store %arg18[%c3, %c0_50], %48 {strides = array<i32>} : memref<22x16xf32, #tpu.memory_space<vmem>>, vector<16x16xf32>,
    %cst_51 = arith.constant 0.000000e+00 : f32
    %54 = vector.broadcast %cst_51 : f32 to vector<16x16xf32>
    %c0_52 = arith.constant 0 : index
    %c0_53 = arith.constant 0 : index
    %55 = vector.load %arg18[%c0_52, %c0_53] : memref<22x16xf32, #tpu.memory_space<vmem>>, vector<16x16xf32>
    %c0_54 = arith.constant 0 : index
    %c0_55 = arith.constant 0 : index
    %c0_56 = arith.constant 0 : index
    %56 = vector.load %arg10[%c0_54, %c0_55, %c0_56] : memref<7x16x16xf32, #tpu.memory_space<vmem>>, vector<1x16x16xf32>
    %57 = vector.shape_cast %56 : vector<1x16x16xf32> to vector<16x16xf32>
    %cst_57 = arith.constant dense<0.000000e+00> : vector<16x16xf32>
    %58 = tpu.matmul %55, %57, %cst_57 {dimension_numbers = #tpu.dot_dimension_numbers<[1], [0], [0], [1], [0, 0, 1, 1], [], []>} : vector<16x16xf32>, vector<16x16xf32>, vector<16x16xf32> -> vector<16x16xf32>
    %59 = arith.addf %54, %58 : vector<16x16xf32>
    %c1_58 = arith.constant 1 : index
    %c0_59 = arith.constant 0 : index
    %60 = vector.load %arg18[%c1_58, %c0_59] : memref<22x16xf32, #tpu.memory_space<vmem>>, vector<16x16xf32>
    %c1_60 = arith.constant 1 : index
    %c0_61 = arith.constant 0 : index
    %c0_62 = arith.constant 0 : index
    %61 = vector.load %arg10[%c1_60, %c0_61, %c0_62] : memref<7x16x16xf32, #tpu.memory_space<vmem>>, vector<1x16x16xf32>
    %62 = vector.shape_cast %61 : vector<1x16x16xf32> to vector<16x16xf32>
    %cst_63 = arith.constant dense<0.000000e+00> : vector<16x16xf32>
    %63 = tpu.matmul %60, %62, %cst_63 {dimension_numbers = #tpu.dot_dimension_numbers<[1], [0], [0], [1], [0, 0, 1, 1], [], []>} : vector<16x16xf32>, vector<16x16xf32>, vector<16x16xf32> -> vector<16x16xf32>
    %64 = arith.addf %59, %63 : vector<16x16xf32>
    %c2_64 = arith.constant 2 : index
    %c0_65 = arith.constant 0 : index
    %65 = vector.load %arg18[%c2_64, %c0_65] : memref<22x16xf32, #tpu.memory_space<vmem>>, vector<16x16xf32>
    %c2_66 = arith.constant 2 : index
    %c0_67 = arith.constant 0 : index
    %c0_68 = arith.constant 0 : index
    %66 = vector.load %arg10[%c2_66, %c0_67, %c0_68] : memref<7x16x16xf32, #tpu.memory_space<vmem>>, vector<1x16x16xf32>
    %67 = vector.shape_cast %66 : vector<1x16x16xf32> to vector<16x16xf32>
    %cst_69 = arith.constant dense<0.000000e+00> : vector<16x16xf32>
    %68 = tpu.matmul %65, %67, %cst_69 {dimension_numbers = #tpu.dot_dimension_numbers<[1], [0], [0], [1], [0, 0, 1, 1], [], []>} : vector<16x16xf32>, vector<16x16xf32>, vector<16x16xf32> -> vector<16x16xf32>
    %69 = arith.addf %64, %68 : vector<16x16xf32>
    %c3_70 = arith.constant 3 : index
    %c0_71 = arith.constant 0 : index
    %70 = vector.load %arg18[%c3_70, %c0_71] : memref<22x16xf32, #tpu.memory_space<vmem>>, vector<16x16xf32>
    %c3_72 = arith.constant 3 : index
    %c0_73 = arith.constant 0 : index
    %c0_74 = arith.constant 0 : index
    %71 = vector.load %arg10[%c3_72, %c0_73, %c0_74] : memref<7x16x16xf32, #tpu.memory_space<vmem>>, vector<1x16x16xf32>
    %72 = vector.shape_cast %71 : vector<1x16x16xf32> to vector<16x16xf32>
    %cst_75 = arith.constant dense<0.000000e+00> : vector<16x16xf32>
    %73 = tpu.matmul %70, %72, %cst_75 {dimension_numbers = #tpu.dot_dimension_numbers<[1], [0], [0], [1], [0, 0, 1, 1], [], []>} : vector<16x16xf32>, vector<16x16xf32>, vector<16x16xf32> -> vector<16x16xf32>
    %74 = arith.addf %69, %73 : vector<16x16xf32>
    %c4 = arith.constant 4 : index
    %c0_76 = arith.constant 0 : index
    %75 = vector.load %arg18[%c4, %c0_76] : memref<22x16xf32, #tpu.memory_space<vmem>>, vector<16x16xf32>
    %c4_77 = arith.constant 4 : index
    %c0_78 = arith.constant 0 : index
    %c0_79 = arith.constant 0 : index
    %76 = vector.load %arg10[%c4_77, %c0_78, %c0_79] : memref<7x16x16xf32, #tpu.memory_space<vmem>>, vector<1x16x16xf32>
    %77 = vector.shape_cast %76 : vector<1x16x16xf32> to vector<16x16xf32>
    %cst_80 = arith.constant dense<0.000000e+00> : vector<16x16xf32>
    %78 = tpu.matmul %75, %77, %cst_80 {dimension_numbers = #tpu.dot_dimension_numbers<[1], [0], [0], [1], [0, 0, 1, 1], [], []>} : vector<16x16xf32>, vector<16x16xf32>, vector<16x16xf32> -> vector<16x16xf32>
    %79 = arith.addf %74, %78 : vector<16x16xf32>
    %c5 = arith.constant 5 : index
    %c0_81 = arith.constant 0 : index
    %80 = vector.load %arg18[%c5, %c0_81] : memref<22x16xf32, #tpu.memory_space<vmem>>, vector<16x16xf32>
    %c5_82 = arith.constant 5 : index
    %c0_83 = arith.constant 0 : index
    %c0_84 = arith.constant 0 : index
    %81 = vector.load %arg10[%c5_82, %c0_83, %c0_84] : memref<7x16x16xf32, #tpu.memory_space<vmem>>, vector<1x16x16xf32>
    %82 = vector.shape_cast %81 : vector<1x16x16xf32> to vector<16x16xf32>
    %cst_85 = arith.constant dense<0.000000e+00> : vector<16x16xf32>
    %83 = tpu.matmul %80, %82, %cst_85 {dimension_numbers = #tpu.dot_dimension_numbers<[1], [0], [0], [1], [0, 0, 1, 1], [], []>} : vector<16x16xf32>, vector<16x16xf32>, vector<16x16xf32> -> vector<16x16xf32>
    %84 = arith.addf %79, %83 : vector<16x16xf32>
    %c6 = arith.constant 6 : index
    %c0_86 = arith.constant 0 : index
    %85 = vector.load %arg18[%c6, %c0_86] : memref<22x16xf32, #tpu.memory_space<vmem>>, vector<16x16xf32>
    %c6_87 = arith.constant 6 : index
    %c0_88 = arith.constant 0 : index
    %c0_89 = arith.constant 0 : index
    %86 = vector.load %arg10[%c6_87, %c0_88, %c0_89] : memref<7x16x16xf32, #tpu.memory_space<vmem>>, vector<1x16x16xf32>
    %87 = vector.shape_cast %86 : vector<1x16x16xf32> to vector<16x16xf32>
    %cst_90 = arith.constant dense<0.000000e+00> : vector<16x16xf32>
    %88 = tpu.matmul %85, %87, %cst_90 {dimension_numbers = #tpu.dot_dimension_numbers<[1], [0], [0], [1], [0, 0, 1, 1], [], []>} : vector<16x16xf32>, vector<16x16xf32>, vector<16x16xf32> -> vector<16x16xf32>
    %89 = arith.addf %84, %88 : vector<16x16xf32>
    %c0_91 = arith.constant 0 : index
    %90 = memref.load %arg11[%c0_91] : memref<1xf32, #tpu.memory_space<smem>>
    %91 = vector.broadcast %90 : f32 to vector<16x16xf32>
    %92 = arith.addf %89, %91 : vector<16x16xf32>
    %cst_92 = arith.constant 0.000000e+00 : f32
    %93 = vector.broadcast %cst_92 : f32 to vector<16x16xf32>
    %94 = arith.cmpf oge, %92, %93 : vector<16x16xf32>
    %c0_93 = arith.constant 0 : index
    %95 = memref.load %arg12[%c0_93] : memref<1xf32, #tpu.memory_space<smem>>
    %96 = vector.broadcast %95 : f32 to vector<16x16xf32>
    %97 = arith.mulf %96, %92 : vector<16x16xf32>
    %98 = arith.select %94, %92, %97 : vector<16x16xi1>, vector<16x16xf32>
    %cst_94 = arith.constant 0.000000e+00 : f32
    %99 = vector.broadcast %cst_94 : f32 to vector<6x16xf32>
    %c0_95 = arith.constant 0 : index
    %c0_96 = arith.constant 0 : index
    %100 = vector.load %arg19[%c0_95, %c0_96] : memref<28x16xf32, #tpu.memory_space<vmem>>, vector<6x16xf32>
    tpu.vector_store %arg19[%c0_95, %c0_96], %99 {strides = array<i32>} : memref<28x16xf32, #tpu.memory_space<vmem>>, vector<6x16xf32>,
    %cst_97 = arith.constant 0.000000e+00 : f32
    %101 = vector.broadcast %cst_97 : f32 to vector<6x16xf32>
    %c22 = arith.constant 22 : index
    %c0_98 = arith.constant 0 : index
    %102 = vector.load %arg19[%c22, %c0_98] : memref<28x16xf32, #tpu.memory_space<vmem>>, vector<6x16xf32>
    tpu.vector_store %arg19[%c22, %c0_98], %101 {strides = array<i32>} : memref<28x16xf32, #tpu.memory_space<vmem>>, vector<6x16xf32>,
    %c6_99 = arith.constant 6 : index
    %c0_100 = arith.constant 0 : index
    %103 = vector.load %arg19[%c6_99, %c0_100] : memref<28x16xf32, #tpu.memory_space<vmem>>, vector<16x16xf32>
    tpu.vector_store %arg19[%c6_99, %c0_100], %98 {strides = array<i32>} : memref<28x16xf32, #tpu.memory_space<vmem>>, vector<16x16xf32>,
    %cst_101 = arith.constant 0.000000e+00 : f32
    %104 = vector.broadcast %cst_101 : f32 to vector<16x16xf32>
    %c0_102 = arith.constant 0 : index
    %c0_103 = arith.constant 0 : index
    %105 = vector.load %arg19[%c0_102, %c0_103] : memref<28x16xf32, #tpu.memory_space<vmem>>, vector<16x16xf32>
    %c0_104 = arith.constant 0 : index
    %c0_105 = arith.constant 0 : index
    %c0_106 = arith.constant 0 : index
    %106 = vector.load %arg13[%c0_104, %c0_105, %c0_106] : memref<7x16x16xf32, #tpu.memory_space<vmem>>, vector<1x16x16xf32>
    %107 = vector.shape_cast %106 : vector<1x16x16xf32> to vector<16x16xf32>
    %cst_107 = arith.constant dense<0.000000e+00> : vector<16x16xf32>
    %108 = tpu.matmul %105, %107, %cst_107 {dimension_numbers = #tpu.dot_dimension_numbers<[1], [0], [0], [1], [0, 0, 1, 1], [], []>} : vector<16x16xf32>, vector<16x16xf32>, vector<16x16xf32> -> vector<16x16xf32>
    %109 = arith.addf %104, %108 : vector<16x16xf32>
    %c2_108 = arith.constant 2 : index
    %c0_109 = arith.constant 0 : index
    %110 = vector.load %arg19[%c2_108, %c0_109] : memref<28x16xf32, #tpu.memory_space<vmem>>, vector<16x16xf32>
    %c1_110 = arith.constant 1 : index
    %c0_111 = arith.constant 0 : index
    %c0_112 = arith.constant 0 : index
    %111 = vector.load %arg13[%c1_110, %c0_111, %c0_112] : memref<7x16x16xf32, #tpu.memory_space<vmem>>, vector<1x16x16xf32>
    %112 = vector.shape_cast %111 : vector<1x16x16xf32> to vector<16x16xf32>
    %cst_113 = arith.constant dense<0.000000e+00> : vector<16x16xf32>
    %113 = tpu.matmul %110, %112, %cst_113 {dimension_numbers = #tpu.dot_dimension_numbers<[1], [0], [0], [1], [0, 0, 1, 1], [], []>} : vector<16x16xf32>, vector<16x16xf32>, vector<16x16xf32> -> vector<16x16xf32>
    %114 = arith.addf %109, %113 : vector<16x16xf32>
    %c4_114 = arith.constant 4 : index
    %c0_115 = arith.constant 0 : index
    %115 = vector.load %arg19[%c4_114, %c0_115] : memref<28x16xf32, #tpu.memory_space<vmem>>, vector<16x16xf32>
    %c2_116 = arith.constant 2 : index
    %c0_117 = arith.constant 0 : index
    %c0_118 = arith.constant 0 : index
    %116 = vector.load %arg13[%c2_116, %c0_117, %c0_118] : memref<7x16x16xf32, #tpu.memory_space<vmem>>, vector<1x16x16xf32>
    %117 = vector.shape_cast %116 : vector<1x16x16xf32> to vector<16x16xf32>
    %cst_119 = arith.constant dense<0.000000e+00> : vector<16x16xf32>
    %118 = tpu.matmul %115, %117, %cst_119 {dimension_numbers = #tpu.dot_dimension_numbers<[1], [0], [0], [1], [0, 0, 1, 1], [], []>} : vector<16x16xf32>, vector<16x16xf32>, vector<16x16xf32> -> vector<16x16xf32>
    %119 = arith.addf %114, %118 : vector<16x16xf32>
    %c6_120 = arith.constant 6 : index
    %c0_121 = arith.constant 0 : index
    %120 = vector.load %arg19[%c6_120, %c0_121] : memref<28x16xf32, #tpu.memory_space<vmem>>, vector<16x16xf32>
    %c3_122 = arith.constant 3 : index
    %c0_123 = arith.constant 0 : index
    %c0_124 = arith.constant 0 : index
    %121 = vector.load %arg13[%c3_122, %c0_123, %c0_124] : memref<7x16x16xf32, #tpu.memory_space<vmem>>, vector<1x16x16xf32>
    %122 = vector.shape_cast %121 : vector<1x16x16xf32> to vector<16x16xf32>
    %cst_125 = arith.constant dense<0.000000e+00> : vector<16x16xf32>
    %123 = tpu.matmul %120, %122, %cst_125 {dimension_numbers = #tpu.dot_dimension_numbers<[1], [0], [0], [1], [0, 0, 1, 1], [], []>} : vector<16x16xf32>, vector<16x16xf32>, vector<16x16xf32> -> vector<16x16xf32>
    %124 = arith.addf %119, %123 : vector<16x16xf32>
    %c8 = arith.constant 8 : index
    %c0_126 = arith.constant 0 : index
    %125 = vector.load %arg19[%c8, %c0_126] : memref<28x16xf32, #tpu.memory_space<vmem>>, vector<16x16xf32>
    %c4_127 = arith.constant 4 : index
    %c0_128 = arith.constant 0 : index
    %c0_129 = arith.constant 0 : index
    %126 = vector.load %arg13[%c4_127, %c0_128, %c0_129] : memref<7x16x16xf32, #tpu.memory_space<vmem>>, vector<1x16x16xf32>
    %127 = vector.shape_cast %126 : vector<1x16x16xf32> to vector<16x16xf32>
    %cst_130 = arith.constant dense<0.000000e+00> : vector<16x16xf32>
    %128 = tpu.matmul %125, %127, %cst_130 {dimension_numbers = #tpu.dot_dimension_numbers<[1], [0], [0], [1], [0, 0, 1, 1], [], []>} : vector<16x16xf32>, vector<16x16xf32>, vector<16x16xf32> -> vector<16x16xf32>
    %129 = arith.addf %124, %128 : vector<16x16xf32>
    %c10 = arith.constant 10 : index
    %c0_131 = arith.constant 0 : index
    %130 = vector.load %arg19[%c10, %c0_131] : memref<28x16xf32, #tpu.memory_space<vmem>>, vector<16x16xf32>
    %c5_132 = arith.constant 5 : index
    %c0_133 = arith.constant 0 : index
    %c0_134 = arith.constant 0 : index
    %131 = vector.load %arg13[%c5_132, %c0_133, %c0_134] : memref<7x16x16xf32, #tpu.memory_space<vmem>>, vector<1x16x16xf32>
    %132 = vector.shape_cast %131 : vector<1x16x16xf32> to vector<16x16xf32>
    %cst_135 = arith.constant dense<0.000000e+00> : vector<16x16xf32>
    %133 = tpu.matmul %130, %132, %cst_135 {dimension_numbers = #tpu.dot_dimension_numbers<[1], [0], [0], [1], [0, 0, 1, 1], [], []>} : vector<16x16xf32>, vector<16x16xf32>, vector<16x16xf32> -> vector<16x16xf32>
    %134 = arith.addf %129, %133 : vector<16x16xf32>
    %c12 = arith.constant 12 : index
    %c0_136 = arith.constant 0 : index
    %135 = vector.load %arg19[%c12, %c0_136] : memref<28x16xf32, #tpu.memory_space<vmem>>, vector<16x16xf32>
    %c6_137 = arith.constant 6 : index
    %c0_138 = arith.constant 0 : index
    %c0_139 = arith.constant 0 : index
    %136 = vector.load %arg13[%c6_137, %c0_138, %c0_139] : memref<7x16x16xf32, #tpu.memory_space<vmem>>, vector<1x16x16xf32>
    %137 = vector.shape_cast %136 : vector<1x16x16xf32> to vector<16x16xf32>
    %cst_140 = arith.constant dense<0.000000e+00> : vector<16x16xf32>
    %138 = tpu.matmul %135, %137, %cst_140 {dimension_numbers = #tpu.dot_dimension_numbers<[1], [0], [0], [1], [0, 0, 1, 1], [], []>} : vector<16x16xf32>, vector<16x16xf32>, vector<16x16xf32> -> vector<16x16xf32>
    %139 = arith.addf %134, %138 : vector<16x16xf32>
    %c0_141 = arith.constant 0 : index
    %140 = memref.load %arg14[%c0_141] : memref<1xf32, #tpu.memory_space<smem>>
    %141 = vector.broadcast %140 : f32 to vector<16x16xf32>
    %142 = arith.addf %139, %141 : vector<16x16xf32>
    %143 = arith.negf %142 : vector<16x16xf32>
    %144 = math.exp %143 : vector<16x16xf32>
    %cst_142 = arith.constant 1.000000e+00 : f32
    %145 = vector.broadcast %cst_142 : f32 to vector<16x16xf32>
    %146 = arith.addf %145, %144 : vector<16x16xf32>
    %147 = arith.divf %145, %146 : vector<16x16xf32>
    %c0_143 = arith.constant 0 : index
    %c0_144 = arith.constant 0 : index
    %148 = vector.load %arg15[%c0_143, %c0_144] : memref<16x64xf32, #tpu.memory_space<vmem>>, vector<16x64xf32>
    %cst_145 = arith.constant dense<0.000000e+00> : vector<16x64xf32>
    %149 = tpu.matmul %147, %148, %cst_145 {dimension_numbers = #tpu.dot_dimension_numbers<[1], [0], [0], [1], [0, 0, 1, 1], [], []>} : vector<16x16xf32>, vector<16x64xf32>, vector<16x64xf32> -> vector<16x64xf32>
    %cst_146 = arith.constant 1.000000e+00 : f32
    %150 = vector.broadcast %cst_146 : f32 to vector<1x64xf32>
    %151 = arith.addf %150, %46 : vector<1x64xf32>
    %152 = vector.broadcast %151 : vector<1x64xf32> to vector<16x64xf32>
    %153 = arith.addf %152, %149 : vector<16x64xf32>
    %154 = arith.mulf %25, %153 : vector<16x64xf32>
    %c0_147 = arith.constant 0 : index
    %c0_148 = arith.constant 0 : index
    %c0_149 = arith.constant 0 : index
    %155 = vector.load %arg16[%c0_147, %c0_148, %c0_149] : memref<1x16x64xf32, #tpu.memory_space<vmem>>, vector<1x16x64xf32>
    %156 = vector.shape_cast %155 : vector<1x16x64xf32> to vector<16x64xf32>
    %157 = vector.shape_cast %154 : vector<16x64xf32> to vector<1x16x64xf32>
    tpu.vector_store %arg16[%c0_147, %c0_148, %c0_149], %157 {strides = array<i32>} : memref<1x16x64xf32, #tpu.memory_space<vmem>>, vector<1x16x64xf32>,
    return
  }
  func.func @transform_0(%arg0: i32) -> (i32, i32, i32) {
    %c0_i32 = arith.constant 0 : i32
    %c0_i32_0 = arith.constant 0 : i32
    %c0_i32_1 = arith.constant 0 : i32
    return %arg0, %c0_i32, %c0_i32_0 : i32, i32, i32
  }
  func.func @transform_1(%arg0: i32) -> (i32, i32, i32) {
    %c0_i32 = arith.constant 0 : i32
    %c0_i32_0 = arith.constant 0 : i32
    %c0_i32_1 = arith.constant 0 : i32
    %c0_i32_2 = arith.constant 0 : i32
    return %c0_i32, %c0_i32_0, %c0_i32_1 : i32, i32, i32
  }
  func.func @transform_2(%arg0: i32) -> (i32, i32) {
    %c0_i32 = arith.constant 0 : i32
    %c0_i32_0 = arith.constant 0 : i32
    %c0_i32_1 = arith.constant 0 : i32
    return %c0_i32, %c0_i32_0 : i32, i32
  }
  func.func @transform_3(%arg0: i32) -> (i32, i32) {
    %c0_i32 = arith.constant 0 : i32
    %c0_i32_0 = arith.constant 0 : i32
    %c0_i32_1 = arith.constant 0 : i32
    return %c0_i32, %c0_i32_0 : i32, i32
  }
  func.func @transform_4(%arg0: i32) -> (i32, i32) {
    %c0_i32 = arith.constant 0 : i32
    %c0_i32_0 = arith.constant 0 : i32
    %c0_i32_1 = arith.constant 0 : i32
    return %c0_i32, %c0_i32_0 : i32, i32
  }
  func.func @transform_5(%arg0: i32) -> i32 {
    %c0_i32 = arith.constant 0 : i32
    %c0_i32_0 = arith.constant 0 : i32
    return %c0_i32 : i32
  }
  func.func @transform_6(%arg0: i32) -> (i32, i32) {
    %c0_i32 = arith.constant 0 : i32
    %c0_i32_0 = arith.constant 0 : i32
    %c0_i32_1 = arith.constant 0 : i32
    return %c0_i32, %c0_i32_0 : i32, i32
  }
  func.func @transform_7(%arg0: i32) -> (i32, i32) {
    %c0_i32 = arith.constant 0 : i32
    %c0_i32_0 = arith.constant 0 : i32
    %c0_i32_1 = arith.constant 0 : i32
    return %c0_i32, %c0_i32_0 : i32, i32
  }
  func.func @transform_8(%arg0: i32) -> (i32, i32) {
    %c0_i32 = arith.constant 0 : i32
    %c0_i32_0 = arith.constant 0 : i32
    %c0_i32_1 = arith.constant 0 : i32
    return %c0_i32, %c0_i32_0 : i32, i32
  }
  func.func @transform_9(%arg0: i32) -> (i32, i32, i32) {
    %c0_i32 = arith.constant 0 : i32
    %c0_i32_0 = arith.constant 0 : i32
    %c0_i32_1 = arith.constant 0 : i32
    %c0_i32_2 = arith.constant 0 : i32
    return %c0_i32, %c0_i32_0, %c0_i32_1 : i32, i32, i32
  }
  func.func @transform_10(%arg0: i32) -> i32 {
    %c0_i32 = arith.constant 0 : i32
    %c0_i32_0 = arith.constant 0 : i32
    return %c0_i32 : i32
  }
  func.func @transform_11(%arg0: i32) -> i32 {
    %c0_i32 = arith.constant 0 : i32
    %c0_i32_0 = arith.constant 0 : i32
    return %c0_i32 : i32
  }
  func.func @transform_12(%arg0: i32) -> (i32, i32, i32) {
    %c0_i32 = arith.constant 0 : i32
    %c0_i32_0 = arith.constant 0 : i32
    %c0_i32_1 = arith.constant 0 : i32
    %c0_i32_2 = arith.constant 0 : i32
    return %c0_i32, %c0_i32_0, %c0_i32_1 : i32, i32, i32
  }
  func.func @transform_13(%arg0: i32) -> i32 {
    %c0_i32 = arith.constant 0 : i32
    %c0_i32_0 = arith.constant 0 : i32
    return %c0_i32 : i32
  }
  func.func @transform_14(%arg0: i32) -> (i32, i32) {
    %c0_i32 = arith.constant 0 : i32
    %c0_i32_0 = arith.constant 0 : i32
    %c0_i32_1 = arith.constant 0 : i32
    return %c0_i32, %c0_i32_0 : i32, i32
  }
  func.func @transform_15(%arg0: i32) -> (i32, i32, i32) {
    %c0_i32 = arith.constant 0 : i32
    %c0_i32_0 = arith.constant 0 : i32
    %c0_i32_1 = arith.constant 0 : i32
    return %arg0, %c0_i32, %c0_i32_0 : i32, i32, i32
  }
}

</mosaic_0001>

<bundles_post_ra>
// kernel: dam_forward.2
= control target key start
LH: loop header
LB: loop body
LE: loop exit
PB: predicated region body
PF: predicated region fallthrough
CT: control target
= control target key end

     0   :  { %s1832_s26 = smov 0   ;;  %s2123_s0 = inlined_call_operand.vmem [shape: bf16[2,16,64], index: 0, kind: input, shape index: {}]   ;;  %s2124_s1 = inlined_call_operand.vmem [shape: bf16[3,64,64], index: 1, kind: input, shape index: {}]   ;;  %s2125_s2 = inlined_call_operand.vmem [shape: f32[1,64], index: 2, kind: input, shape index: {}]   ;;  %s2126_s3 = inlined_call_operand.vmem [shape: f32[64,2], index: 3, kind: input, shape index: {}]   ;;  %s2127_s4 = inlined_call_operand.vmem [shape: f32[1,2], index: 4, kind: input, shape index: {}]   ;;  %s2128_s5 = inlined_call_operand.<no memory space> [shape: f32[1], index: 5, kind: input, shape index: {}]   ;;  %s2129_s6 = inlined_call_operand.vmem [shape: f32[2,2], index: 6, kind: input, shape index: {}]   ;;  %s2130_s7 = inlined_call_operand.vmem [shape: f32[2,64], index: 7, kind: input, shape index: {}]   ;;  %s2131_s8 = inlined_call_operand.vmem [shape: f32[64,16], index: 8, kind: input, shape index: {}]   ;;  %s2132_s9 = inlined_call_operand.vmem [shape: f32[7,16,16], index: 9, kind: input, shape index: {}]   ;;  %s2133_s10 = inlined_call_operand.<no memory space> [shape: f32[1], index: 10, kind: input, shape index: {}]   ;;  %s2134_s11 = inlined_call_operand.<no memory space> [shape: f32[1], index: 11, kind: input, shape index: {}]   ;;  %s2135_s12 = inlined_call_operand.vmem [shape: f32[7,16,16], index: 12, kind: input, shape index: {}]   ;;  %s2136_s14 = inlined_call_operand.vmem [shape: f32[16,64], index: 14, kind: input, shape index: {}]   ;;  %s2137_s15 = inlined_call_operand.vmem [shape: bf16[2,16,64], index: 15, kind: output, shape index: {}]   ;;  %s2138_s13 = inlined_call_operand.<no memory space> [shape: f32[1], index: 13, kind: input, shape index: {}]  }
   0x1   :  { %20 = sst [smem:[#allocation5]] %s2128_s5 }
   0x2   :  { %21 = sst [smem:[#allocation6]] %s2133_s10 }
   0x3   :  { %22 = sst [smem:[#allocation7]] %s2134_s11 }
   0x4   :  { %23 = sst [smem:[#allocation8]] %s2138_s13 }
   0x5 LB: > { %s1546_s5 = sadd.s32 4294967295, %s1737_s26   ;;  %p1550_p0 = scmp.ge.s32.totalorder %s1737_s26, 1  ;;  %s1737_s26 = sphi %s1832_s26, %s29_s26  }
   0x6   : > { %p441_p1 = scmp.lt.s32.totalorder %s1737_s26, 3 }
   0x8   : > { %p442_p2 = pnand %p1550_p0, %p441_p1 }
   0x9   : > { %p489_p3 = scmp.lt.s32.totalorder (!%p442_p2), %s1546_s5, 1  ;;  %s776_s16 = sld [smem:[#allocation5]] (!%p442_p2) }
   0xa   : > { %445 = sbr.rel (%p442_p2) target bundleno = 842 (0x34a), region = 80  ;;  %s1125_s20 = sld [smem:[#allocation7]] (!%p442_p2) }
   0xb   : > { %s1383_s23 = sld [smem:[#allocation8]] (!%p442_p2) }
   0xf   : > { %v1693_v0 = vld [vmem:[%s2124_s1 + $0x18] sm:$0xff]  ;;  %vm500_vm0 = vcmask 516096   ;;  %vm501_vm1 = vsmask.f32 256  ;;  %v1692_v3 = vld [vmem:[%s2124_s1 + $0x10] sm:$0xff]  ;;  %s2142_s5 = smov (!%p489_p3, %s1546_s5), 1 }
  0x10   : > { %v1701_v1 = vld [vmem:[%s2124_s1 + $0x58] sm:$0xff]  ;;  %658 = vmatpush.bf16.msra.mxu1 %v1693_v0  ;;  %v1700_v4 = vld [vmem:[%s2124_s1 + $0x50] sm:$0xff]  ;;  %vm506_vm2 = vsmask.f32 7938  ;;  %vm1862_vm3 = vmand %vm500_vm0, %vm501_vm1  ;;  %s1688_s25 = sshll.u32 %s2142_s5, 3  ;;  %vm535_vm5 = vcmask 519168  }
  0x11   : > { %v1697_v2 = vld [vmem:[%s2124_s1 + $0x38] sm:$0xff]  ;;  %716 = vmatpush.bf16.msra.mxu2 %v1701_v1  ;;  %v1696_v5 = vld [vmem:[%s2124_s1 + $0x30] sm:$0xff]  ;;  %v503_v7 = vld [vmem:[#allocation2] sm:$0x1]  ;;  %s493_s28 = scalar_lea.vmem %s2123_s0, %s1688_s25  ;;  %vm513_vm6 = vsmask.f32 4368  ;;  %s498_s29 = scalar_lea.vmem %s2137_s15, %s1688_s25 }
  0x12   : > { %618 = vmatpush.bf16.msra.mxu0 %v1697_v2  ;;  %v1691_v8 = vld [vmem:[%s2124_s1 + $0x8] sm:$0xff]  ;;  %v504_v10 = vsel %vm1862_vm3, 0, %v503_v7  ;;  %vm507_vm4 = vmand %vm500_vm0, %vm506_vm2  ;;  %v511_v14 = vld [vmem:[%s493_s28] sm:$0xf]  ;;  %vm610_vm9 = vcmask 523264   ;;  %vm681_vm10 = vcmask 1046528  }
  0x13   : > { %v1699_v9 = vld [vmem:[%s2124_s1 + $0x48] sm:$0xff]  ;;  %505 = vst [vmem:[#allocation2] sm:$0x1] %v504_v10  ;;  %v512_v15 = vld [vmem:[%s493_s28 + $0x4] sm:$0xf]  ;;  %v516_v16 = vshrl.u32 %v511_v14, 16  ;;  %vm514_vm7 = vmor %vm501_vm1, %vm513_vm6 }
  0x14   : > { %v508_v11 = vld [vmem:[#allocation2 + $0x8] sm:$0x1]  ;;  %659 = vmatpush.bf16.msra.mxu1 %v1692_v3  ;;  %v519_v17 = vshll.u32 %v511_v14, 16  ;;  %v524_v18 = vshrl.u32 %v512_v15, 16  ;;  %v527_v19 = vshll.u32 %v512_v15, 16  ;;  %v1690_v22 = vld [vmem:[%s2124_s1] sm:$0xff]  ;;  %vm536_vm8 = vmand %vm535_vm5, %vm506_vm2 }
  0x15   : > { %v1695_v12 = vld [vmem:[%s2124_s1 + $0x28] sm:$0xff]  ;;  %v509_v13 = vsel %vm507_vm4, 0, %v508_v11  ;;  %717 = vmatpush.bf16.msra.mxu2 %v1700_v4  ;;  %v518_v20 = vrot.slane %v516_v16, 7  ;;  %v1698_v23 = vld [vmem:[%s2124_s1 + $0x40] sm:$0xff]  ;;  %vm573_vm11 = vsmask.f32 7424 }
  0x16   : > { %510 = vst [vmem:[#allocation2 + $0x8] sm:$0x1] %v509_v13  ;;  %619 = vmatpush.bf16.msra.mxu0 %v1696_v5  ;;  %v526_v21 = vrot.slane %v524_v18, 7  ;;  %v1694_v28 = vld [vmem:[%s2124_s1 + $0x20] sm:$0xff]  ;;  %v836_v51 = vld [vmem:[%s2131_s8 + $0x38] sm:$0xff]  ;;  %v835_v52 = vld [vmem:[%s2131_s8 + $0x30] sm:$0xff] }
  0x17   : > { %v521_v24 = vor.u32 %v519_v17, %v518_v20  ;;  %v522_v25 = vrot.slane %v518_v20, 4  ;;  %v834_v53 = vld [vmem:[%s2131_s8 + $0x28] sm:$0xff]  ;;  %v833_v54 = vld [vmem:[%s2131_s8 + $0x20] sm:$0xff]  ;;  %v832_v55 = vld [vmem:[%s2131_s8 + $0x18] sm:$0xff]  ;;  %vm866_vm12 = vcmask 124928   ;;  %vm785_vm13 = vcmask 1041408  }
  0x18   : > { %660 = vmatpush.bf16.msra.mxu1 %v1691_v8  ;;  %v529_v26 = vor.u32 %v527_v19, %v526_v21  ;;  %v531_v27 = vrot.slane %v526_v21, 4  ;;  %v831_v56 = vld [vmem:[%s2131_s8 + $0x10] sm:$0xff]  ;;  %v830_v57 = vld [vmem:[%s2131_s8 + $0x8] sm:$0xff]  ;;  %v829_v58 = vld [vmem:[%s2131_s8] sm:$0xff]  ;;  %vm869_vm14 = vcmask 130048   ;;  %vm781_vm0 = vcmask 15360  }
  0x19   : > { %718 = vmatpush.bf16.msra.mxu2 %v1699_v9  ;;  %v750_v59 = vld [vmem:[%s2126_s3 + $0x38] sm:$0xff]  ;;  %v749_v60 = vld [vmem:[%s2126_s3 + $0x30] sm:$0xff]  ;;  %v748_v61 = vld [vmem:[%s2126_s3 + $0x28] sm:$0xff]  ;;  %vm1131_vm1 = vcmask 128000   ;;  %s2070_s28 = sld [smem:[#allocation6]] }
  0x1a   : > { %620 = vmatpush.bf16.msra.mxu0 %v1695_v12  ;;  %v537_v29 = vld [vmem:[#allocation2] sm:$0xf]  ;;  %v530_v30 = vsel %vm514_vm7, %v522_v25, %v529_v26  ;;  %763 = vmatpush.msra.mxu3 %v750_v59  ;;  %v746_v63 = vld [vmem:[%s2126_s3 + $0x18] sm:$0xff]  ;;  %v745_v0 = vld [vmem:[%s2126_s3 + $0x10] sm:$0xff] }
  0x1b   : > { %v538_v31 = vsel %vm536_vm8, %v521_v24, %v537_v29  ;;  %541 = vst.msk [vmem:[#allocation2 + $0x4] sm:$0xf] %vm535_vm5, %v530_v30  ;;  %v747_v62 = vld [vmem:[%s2126_s3 + $0x20] sm:$0xff]  ;;  %v744_v1 = vld [vmem:[%s2126_s3 + $0x8] sm:$0xff]  ;;  %v1629_v25 = vld [vmem:[%s2132_s9 + $0x18] sm:$0xff] }
  0x1c   : > { %661 = vmatpush.bf16.msra.mxu1 %v1690_v22  ;;  %539 = vst [vmem:[#allocation2] sm:$0xf] %v538_v31  ;;  %764 = vmatpush.msra.mxu3 %v749_v60  ;;  %v743_v2 = vld [vmem:[%s2126_s3] sm:$0xff]  ;;  %v875_v26 = vld [vmem:[%s2132_s9 + $0x8] sm:$0xff]  ;;  %v1628_v29 = vld [vmem:[%s2132_s9 + $0x10] sm:$0xff] }
  0x1d   : > { %v542_v32 = vld [vmem:[#allocation2 + $0x8] sm:$0x1]  ;;  %719 = vmatpush.bf16.msra.mxu2 %v1698_v23  ;;  %v1718_v6 = vld [vmem:[%s2125_s2] ss:$0 sm:$0xff]  ;;  %v1638_v31 = vld [vmem:[%s2132_s9 + $0x30] sm:$0xff] }
  0x1e   : > { %v543_v33 = vsel %vm1862_vm3, %v531_v27, %v542_v32  ;;  %621 = vmatpush.bf16.msra.mxu0 %v1694_v28  ;;  %765 = vmatpush.msra.mxu3 %v748_v61  ;;  %v1639_v27 = vld [vmem:[%s2132_s9 + $0x38] sm:$0xff]  ;;  %v1739_v28 = vmov 0.0   ;;  %v874_v30 = vld [vmem:[%s2132_s9] sm:$0xff]  ;;  %v1643_v32 = vld [vmem:[%s2132_s9 + $0x48] sm:$0xff] }
  0x1f   : > { %544 = vst [vmem:[#allocation2 + $0x8] sm:$0x1] %v543_v33  ;;  %v1647_v33 = vld [vmem:[%s2132_s9 + $0x58] sm:$0xff] }
  0x20   : > { %766 = vmatpush.msra.mxu3 %v747_v62  ;;  %867 = vst.msk [vmem:[#allocation3] sm:$0x7] %vm866_vm12, %v1739_v28  ;;  %901 = vmatpush.msrb.mxu1 %v1629_v25  ;;  %v1676_v25 = vld [vmem:[%s2135_s12 + $0x60] sm:$0xff] }
  0x21   : > { %930 = vmatpush.msrb.mxu2 %v875_v26  ;;  %868 = vst.msk [vmem:[#allocation3 + $0x13] sm:$0x7] %vm866_vm12, %v1739_v28  ;;  %v1668_v26 = vld [vmem:[%s2135_s12 + $0x40] sm:$0xff] }
  0x22   : > { %v1706_v36 = vld [vmem:[#allocation2] sm:$0xf0]  ;;  %851 = vmatpush.msrb.mxu0 %v836_v51  ;;  %767 = vmatpush.msra.mxu3 %v746_v63  ;;  %v777_v51 = vstv %s776_s16  ;;  %1132 = vst.msk [vmem:[#allocation4] sm:$0x3f] %vm1131_vm1, %v1739_v28 }
  0x23   : > { %v1707_v34 = vld [vmem:[#allocation2] sm:$0xe]  ;;  %902 = vmatpush.msrb.mxu1 %v1628_v29  ;;  %931 = vmatpush.msrb.mxu2 %v874_v30  ;;  %1133 = vst.msk [vmem:[#allocation4 + $0x16] sm:$0x3f] %vm1131_vm1, %v1739_v28 }
  0x24   : > { %v1703_v35 = vld [vmem:[#allocation2] sm:$0xff]   ;;  %v1708_v39 = vor.u32 %v1707_v34, %v1706_v36  ;;  %852 = vmatpush.msrb.mxu0 %v835_v52  ;;  %768 = vmatpush.msra.mxu3 %v745_v0 }
  0x25   : > { %v577_v37 = vshll.u32 %v1703_v35, 16  ;;  %1596 = vmatmul.msk.bf16.vlgmr.msra.gmra.mxu1 %vm610_vm9, %v1703_v35  ;;  %v575_v40 = vshrl.u32 %v1703_v35, 16  ;;  %v1642_v34 = vld [vmem:[%s2132_s9 + $0x40] sm:$0xff]  ;;  %v1646_v35 = vld [vmem:[%s2132_s9 + $0x50] sm:$0xff] }
  0x26   : > { %v555_v38 = vld [vmem:[#allocation2 + $0x8] sm:$0x1]  ;;  %v682_v44 = vrot.slane %v1708_v39, 1  ;;  %853 = vmatpush.msrb.mxu0 %v834_v53  ;;  %769 = vmatpush.msra.mxu3 %v744_v1  ;;  %v780_v36 = vld [vmem:[%s2129_s6] sm:$0x3] }
  0x27   : > { %v570_v41 = vunpack.c.l.b16 %v555_v38  ;;  %v579_v42 = vrot.slane %v577_v37, 1  ;;  %1036 = vmatpush.msra.mxu1 %v1643_v32  ;;  %v1635_v38 = vld [vmem:[%s2132_s9 + $0x28] sm:$0xff]  ;;  %v1634_v39 = vld [vmem:[%s2132_s9 + $0x20] sm:$0xff] }
  0x28   : > { %854 = vmatpush.msrb.mxu0 %v833_v54  ;;  %770 = vmatpush.msra.mxu3 %v743_v2  ;;  %v1661_v2 = vld [vmem:[%s2135_s12 + $0x28] sm:$0xff] }
  0x29   : > { %v572_v43 = vpack.c.b16 %v570_v41, %v570_v41  ;;  %v580_v45 = vor.u32 %v579_v42, %v575_v40  ;;  %1037 = vmatpush.msra.mxu1 %v1642_v34 }
  0x2a   : > { %855 = vmatpush.msrb.mxu0 %v832_v55  ;;  %1623 = vmatpush.msk.msrb.mxu3 %vm785_vm13, %v780_v36 }
  0x2b   : > { %v683_v46 = vrot.slane %v572_v43, 1  ;;  %v582_v47 = vshll.u32 %v572_v43, 16 }
  0x2c   : > { %856 = vmatpush.msrb.mxu0 %v831_v56  ;;  %v1651_v56 = vld [vmem:[%s2132_s9 + $0x68] sm:$0xff] }
  0x2d   : > { %v684_v48 = vsel %vm681_vm10, %v682_v44, %v683_v46  ;;  %v584_v49 = vrot.slane %v582_v47, 1 }
  0x2e   : > { %1621 = vmatmul.msk.bf16.vlgmr.msra.gmra.mxu2 %vm610_vm9, %v684_v48  ;;  %857 = vmatpush.msrb.mxu0 %v830_v57 }
  0x2f   : > { %v585_v50 = vsel %vm573_vm11, %v580_v45, %v584_v49  ;;  %1072 = vmatpush.msra.mxu2 %v1647_v33  ;;  %v751_v49 = vld [vmem:[%s2127_s4] sm:$0x1] }
  0x30   : > { %1579 = vmatmul.msk.bf16.vlgmr.msra.gmra.mxu0 %vm610_vm9, %v585_v50 }
  0x31   : > { %858 = vmatpush.msrb.mxu0 %v829_v58  ;;  %1073 = vmatpush.msra.mxu2 %v1646_v35  ;;  %v1650_v58 = vld [vmem:[%s2132_s9 + $0x60] sm:$0xff]  ;;  %v1120_v35 = vstv %s2070_s28 }
  0x33   : > { %1000 = vmatpush.msra.mxu0 %v1639_v27  ;;  %v1672_v27 = vld [vmem:[%s2135_s12 + $0x50] sm:$0xff] }
  0x35   : > { %1001 = vmatpush.msra.mxu0 %v1638_v31 }
  0xa2   : > { %v663_v3 = vpop.f32.mrf.mxu1 }
  0xaa   : > { %v665_v11 = vpop.f32.mrf.mxu1 }
  0xad   : > { %v623_v4 = vpop.f32.mrf.mxu0 }
  0xae   : > { %v664_v5 = vadd.f32 %v663_v3, %v623_v4  ;;  %v1655_v3 = vld [vmem:[%s2135_s12 + $0x18] sm:$0xff]  ;;  %v1139_v4 = vld [vmem:[%s2135_s12 + $0x8] sm:$0xff] }
  0xb1   : > { %v721_v7 = vpop.f32.mrf.mxu2 }
  0xb2   : > { %v726_v8 = vadd.f32 %v721_v7, %v664_v5 }
  0xb4   : > { %v1954_v9 = vadd.f32 %v1718_v6, %v726_v8  ;;  %v1660_v8 = vld [vmem:[%s2135_s12 + $0x20] sm:$0xff] }
  0xb5   : > { %v625_v10 = vpop.f32.mrf.mxu0 }
  0xb6   : > { %1626 = vmatmul.msk.f32.vlgmr.msrb.gmra.mxu0 %vm610_vm9, %v1954_v9  ;;  %v666_v12 = vadd.f32 %v665_v11, %v625_v10  ;;  %v734_v16 = vsel %vm610_vm9, %v1954_v9, 0.0  ;;  %v1654_v10 = vld [vmem:[%s2135_s12 + $0x10] sm:$0xff]  ;;  %v1138_v11 = vld [vmem:[%s2135_s12] sm:$0xff] }
  0xb7   : > { %1165 = vmatpush.msrb.mxu0 %v1655_v3 }
  0xb9   : > { %v723_v13 = vpop.f32.mrf.mxu2  ;;  %1166 = vmatpush.msrb.mxu0 %v1654_v10 }
  0xba   : > { %v727_v14 = vadd.f32 %v723_v13, %v666_v12  ;;  %v1664_v13 = vld [vmem:[%s2135_s12 + $0x30] sm:$0xff] }
  0xbc   : > { %v1958_v15 = vadd.f32 %v1718_v6, %v727_v14  ;;  %v1665_v6 = vld [vmem:[%s2135_s12 + $0x38] sm:$0xff]  ;;  %v1677_v14 = vld [vmem:[%s2135_s12 + $0x68] sm:$0xff] }
  0xbe   : > { %v735_v17 = vsel %vm610_vm9, %v1958_v15, 0.0  ;;  %1627 = vmatmul.msk.f32.gmra.mxu0 %vm610_vm9, %v1958_v15 }
  0xbf   : > { %v736_v18 = vadd.f32 %v735_v17, %v734_v16  ;;  %v1669_v16 = vld [vmem:[%s2135_s12 + $0x48] sm:$0xff] }
  0xc1   : > { %v737_v19 = vrot.slane %v736_v18, 4 }
  0xc3   : > { %v738_v20 = vadd.f32 %v737_v19, %v736_v18  ;;  %v1673_v18 = vld [vmem:[%s2135_s12 + $0x58] sm:$0xff] }
  0xc5   : > { %v739_v21 = vrot.slane %v738_v20, 2 }
  0xc7   : > { %v740_v22 = vadd.f32 %v739_v21, %v738_v20 }
  0xc9   : > { %v741_v23 = vrot.slane %v740_v22, 1 }
  0xcb   : > { %v742_v24 = vadd.f32 %v741_v23, %v740_v22 }
  0xcd   : > { %1622 = vmatmul.msk.f32.vlgmr.msra.gmra.mxu3 %vm610_vm9, %v742_v24 }
  0xce   : > { %964 = vmatpush.msra.mxu3 %v1635_v38 }
  0xd0   : > { %965 = vmatpush.msra.mxu3 %v1634_v39  ;;  %v1126_v39 = vstv %s1125_s20 }
 0x133   : > { %v860_v37 = vpop.f32.mrf.mxu0 }
 0x134   : > { %870 = vst.msk [vmem:[#allocation3 + $0x3] sm:$0xff] %vm869_vm14, %v860_v37 }
 0x13b   : > { %v863_v40 = vpop.f32.mrf.mxu0  ;;  %v876_v41 = vld [vmem:[#allocation3 + $0x1] sm:$0xff] }
 0x13c   : > { %v872_v42 = vld [vmem:[#allocation3] sm:$0xff]  ;;  %871 = vst.msk [vmem:[#allocation3 + $0xb] sm:$0xff] %vm869_vm14, %v863_v40  ;;  %1630 = vmatmul.msk.f32.vlgmr.msrb.gmra.mxu1 %vm869_vm14, %v876_v41 }
 0x13d   : > { %v975_v43 = vld [vmem:[#allocation3 + $0x3] sm:$0xff]  ;;  %1632 = vmatmul.msk.f32.vlgmr.msrb.gmra.mxu2 %vm869_vm14, %v872_v42  ;;  %1194 = vmatpush.msrb.mxu1 %v1139_v4 }
 0x13e   : > { %1640 = vmatmul.msk.f32.vlgmr.msra.gmra.mxu0 %vm869_vm14, %v975_v43  ;;  %v939_v59 = vld [vmem:[#allocation3 + $0x2] sm:$0xff]  ;;  %1228 = vmatpush.msrb.mxu2 %v1661_v2 }
 0x13f   : > { %1195 = vmatpush.msrb.mxu1 %v1138_v11  ;;  %1300 = vmatpush.msra.mxu0 %v1669_v16 }
 0x140   : > { %1229 = vmatpush.msrb.mxu2 %v1660_v8 }
 0x141   : > { %1301 = vmatpush.msra.mxu0 %v1668_v26 }
 0x143   : > { %v877_v44 = vld [vmem:[#allocation3 + $0x9] sm:$0xff] }
 0x144   : > { %v873_v45 = vld [vmem:[#allocation3 + $0x8] sm:$0xff]  ;;  %1631 = vmatmul.msk.f32.gmra.mxu1 %vm869_vm14, %v877_v44 }
 0x145   : > { %v976_v46 = vld [vmem:[#allocation3 + $0xb] sm:$0xff]  ;;  %1633 = vmatmul.msk.f32.gmra.mxu2 %vm869_vm14, %v873_v45 }
 0x146   : > { %1641 = vmatmul.msk.f32.gmra.mxu0 %vm869_vm14, %v976_v46  ;;  %v1011_v47 = vld [vmem:[#allocation3 + $0x4] sm:$0xff]  ;;  %v1012_v54 = vld [vmem:[#allocation3 + $0xc] sm:$0xff] }
 0x147   : > { %v1047_v48 = vld [vmem:[#allocation3 + $0x5] sm:$0xff]  ;;  %v1048_v55 = vld [vmem:[#allocation3 + $0xd] sm:$0xff] }
 0x148   : > { %v940_v60 = vld [vmem:[#allocation3 + $0xa] sm:$0xff] }
 0x149   : > { %v1083_v61 = vld [vmem:[#allocation3 + $0x6] sm:$0xff]  ;;  %v1084_v62 = vld [vmem:[#allocation3 + $0xe] sm:$0xff] }
 0x14c   : > { %1644 = vmatmul.msk.f32.vlgmr.msra.gmra.mxu1 %vm869_vm14, %v1011_v47 }
 0x14d   : > { %1648 = vmatmul.msk.f32.vlgmr.msra.gmra.mxu2 %vm869_vm14, %v1047_v48  ;;  %1336 = vmatpush.msra.mxu1 %v1673_v18 }
 0x14e   : > { %1372 = vmatpush.msra.mxu2 %v1677_v14 }
 0x14f   : > { %1337 = vmatpush.msra.mxu1 %v1672_v27 }
 0x150   : > { %v772_v50 = vpop.f32.mrf.mxu3  ;;  %1373 = vmatpush.msra.mxu2 %v1676_v25 }
 0x151   : > { %v773_v52 = vadd.f32 %v772_v50, %v751_v49 }
 0x153   : > { %vm775_vm15 = vcmp.ge.f32.partialorder %v773_v52, 0.0  ;;  %v778_v53 = vmul.f32 %v777_v51, %v773_v52  ;;  %v828_v51 = vld [vmem:[%s2130_s7] sm:$0x3] }
 0x154   : > { %1645 = vmatmul.msk.f32.gmra.mxu1 %vm869_vm14, %v1012_v54 }
 0x155   : > { %1649 = vmatmul.msk.f32.gmra.mxu2 %vm869_vm14, %v1048_v55  ;;  %v779_v57 = vsel %vm775_vm15, %v773_v52, %v778_v53 }
 0x156   : > { %1624 = vmatmul.msk.f32.vlgmr.msrb.gmra.mxu3 %vm781_vm0, %v779_v57 }
 0x157   : > { %1108 = vmatpush.msrb.mxu3 %v1651_v56 }
 0x159   : > { %1109 = vmatpush.msrb.mxu3 %v1650_v58 }
 0x15e   : > { %1636 = vmatmul.msk.f32.vlgmr.msra.gmra.mxu3 %vm869_vm14, %v939_v59 }
 0x15f   : > { %1264 = vmatpush.msra.mxu3 %v1665_v6 }
 0x161   : > { %1265 = vmatpush.msra.mxu3 %v1664_v13 }
 0x166   : > { %1637 = vmatmul.msk.f32.gmra.mxu3 %vm869_vm14, %v940_v60 }
 0x16e   : > { %1652 = vmatmul.msk.f32.vlgmr.msrb.gmra.mxu3 %vm869_vm14, %v1083_v61 }
 0x176   : > { %1653 = vmatmul.msk.f32.gmra.mxu3 %vm869_vm14, %v1084_v62 }
 0x1b9   : > { %v904_v63 = vpop.f32.mrf.mxu1 }
 0x1bb   : > { %v1003_v20 = vpop.f32.mrf.mxu0 }
 0x1c0   : > { %v933_v0 = vpop.f32.mrf.mxu2 }
 0x1c1   : > { %v907_v5 = vpop.f32.mrf.mxu1  ;;  %v934_v12 = vadd.f32 %v933_v0, %v904_v63 }
 0x1c3   : > { %v1006_v31 = vpop.f32.mrf.mxu0 }
 0x1c8   : > { %v936_v17 = vpop.f32.mrf.mxu2 }
 0x1c9   : > { %v1039_v22 = vpop.f32.mrf.mxu1  ;;  %v937_v24 = vadd.f32 %v936_v17, %v907_v5 }
 0x1d0   : > { %v1075_v30 = vpop.f32.mrf.mxu2 }
 0x1d1   : > { %v1042_v37 = vpop.f32.mrf.mxu1 }
 0x1d8   : > { %v1078_v43 = vpop.f32.mrf.mxu2 }
 0x1d9   : > { %v806_v1 = vpop.f32.mrf.mxu3 }
 0x1da   : > { %v1625_v38 = vmul.f32 -1.442695, %v806_v1 }
 0x1dc   : > { %1719 = vpow2.f32 %v1625_v38 }
 0x1e1   : > { %v967_v7 = vpop.f32.mrf.mxu3 }
 0x1e2   : > { %v973_v19 = vadd.f32 %v967_v7, %v934_v12  ;;  %v1720_v49 = vpop.eup %1719 }
 0x1e3   : > { %v812_v52 = vadd.f32 1.0, %v1720_v49 }
 0x1e4   : > { %v1009_v21 = vadd.f32 %v1003_v20, %v973_v19 }
 0x1e5   : > { %1721 = vrcp.f32 %v812_v52  ;;  %v824_v6 = vand.u32 2147483648, %v812_v52  ;;  %vm818_vm6 = vweird.f32 %v812_v52  ;;  %v822_v7 = vand.u32 2147483647, %v812_v52 }
 0x1e6   : > { %v1045_v29 = vadd.f32 %v1039_v22, %v1009_v21  ;;  %v1426_v22 = vld [vmem:[%s2136_s14 + $0x8] sm:$0xff] }
 0x1e7   : > { %v825_v10 = vor.u32 1.1754944e-38, %v824_v6  ;;  %vm823_vm8 = vcmp.eq.f32.partialorder %v822_v7, 8.507059e+37  ;;  %1447 = vmatpush.msrb.mxu3 %v1426_v22 }
 0x1e8   : > { %v1081_v33 = vadd.f32 %v1075_v30, %v1045_v29 }
 0x1e9   : > { %v970_v23 = vpop.f32.mrf.mxu3 }
 0x1ea   : > { %v974_v28 = vadd.f32 %v970_v23, %v937_v24  ;;  %v1425_v23 = vld [vmem:[%s2136_s14] sm:$0xff] }
 0x1eb   : > { %v1722_v62 = vpop.eup %1721  ;;  %1448 = vmatpush.msrb.mxu3 %v1425_v23 }
 0x1ec   : > { %v1010_v32 = vadd.f32 %v1006_v31, %v974_v28  ;;  %v814_v63 = vmul.f32 %v1722_v62, %v812_v52  ;;  %vm819_vm4 = vweird.f32 %v1722_v62 }
 0x1ed   : > { %vm820_vm7 = vmor %vm818_vm6, %vm819_vm4 }
 0x1ee   : > { %v1046_v41 = vadd.f32 %v1042_v37, %v1010_v32  ;;  %v815_v0 = vsub.f32 1.0, %v814_v63 }
 0x1f0   : > { %v1082_v45 = vadd.f32 %v1078_v43, %v1046_v41  ;;  %v816_v1 = vmul.f32 %v1722_v62, %v815_v0 }
 0x1f1   : > { %v1111_v34 = vpop.f32.mrf.mxu3 }
 0x1f2   : > { %v1117_v36 = vadd.f32 %v1111_v34, %v1081_v33  ;;  %v817_v5 = vadd.f32 %v1722_v62, %v816_v1  ;;  %v1384_v33 = vstv %s1383_s23 }
 0x1f4   : > { %v1121_v40 = vadd.f32 %v1120_v35, %v1117_v36  ;;  %v821_v8 = vsel %vm820_vm7, %v1722_v62, %v817_v5 }
 0x1f5   : > { %v826_v11 = vsel %vm823_vm8, %v825_v10, %v821_v8 }
 0x1f6   : > { %vm1123_vm2 = vcmp.ge.f32.partialorder %v1121_v40, 0.0  ;;  %v1127_v42 = vmul.f32 %v1126_v39, %v1121_v40 }
 0x1f8   : > { %v1129_v44 = vsel %vm1123_vm2, %v1121_v40, %v1127_v42 }
 0x1f9   : > { %1134 = vst.msk [vmem:[#allocation4 + $0x6] sm:$0xff] %vm869_vm14, %v1129_v44  ;;  %v1114_v46 = vpop.f32.mrf.mxu3 }
 0x1fa   : > { %v1118_v47 = vadd.f32 %v1114_v46, %v1082_v45 }
 0x1fc   : > { %v1122_v48 = vadd.f32 %v1120_v35, %v1118_v47 }
 0x1fe   : > { %vm1124_vm3 = vcmp.ge.f32.partialorder %v1122_v48, 0.0  ;;  %v1128_v50 = vmul.f32 %v1126_v39, %v1122_v48 }
 0x200   : > { %v1130_v53 = vsel %vm1124_vm3, %v1122_v48, %v1128_v50  ;;  %v1140_v54 = vld [vmem:[#allocation4 + $0x2] sm:$0xff] }
 0x201   : > { %v1136_v55 = vld [vmem:[#allocation4] sm:$0xff]  ;;  %1135 = vst.msk [vmem:[#allocation4 + $0xe] sm:$0xff] %vm869_vm14, %v1130_v53  ;;  %1656 = vmatmul.msk.f32.vlgmr.msrb.gmra.mxu0 %vm869_vm14, %v1140_v54 }
 0x202   : > { %v1203_v56 = vld [vmem:[#allocation4 + $0x4] sm:$0xff]  ;;  %1658 = vmatmul.msk.f32.vlgmr.msrb.gmra.mxu1 %vm869_vm14, %v1136_v55  ;;  %1684 = vmatpush.msk.msrb.mxu0 %vm785_vm13, %v828_v51 }
 0x203   : > { %v1239_v57 = vld [vmem:[#allocation4 + $0x6] sm:$0xff]  ;;  %1662 = vmatmul.msk.f32.vlgmr.msrb.gmra.mxu2 %vm869_vm14, %v1203_v56 }
 0x204   : > { %1666 = vmatmul.msk.f32.vlgmr.msra.gmra.mxu3 %vm869_vm14, %v1239_v57 }
 0x208   : > { %v1141_v58 = vld [vmem:[#allocation4 + $0xa] sm:$0xff]  ;;  %v1312_v3 = vld [vmem:[#allocation4 + $0x12] sm:$0xff] }
 0x209   : > { %v1137_v59 = vld [vmem:[#allocation4 + $0x8] sm:$0xff]  ;;  %1657 = vmatmul.msk.f32.gmra.mxu0 %vm869_vm14, %v1141_v58  ;;  %v1276_v2 = vld [vmem:[#allocation4 + $0x10] sm:$0xff] }
 0x20a   : > { %v1204_v60 = vld [vmem:[#allocation4 + $0xc] sm:$0xff]  ;;  %1659 = vmatmul.msk.f32.gmra.mxu1 %vm869_vm14, %v1137_v59  ;;  %v1348_v4 = vld [vmem:[#allocation4 + $0x14] sm:$0xff] }
 0x20b   : > { %v1240_v61 = vld [vmem:[#allocation4 + $0xe] sm:$0xff]  ;;  %1663 = vmatmul.msk.f32.gmra.mxu2 %vm869_vm14, %v1204_v60 }
 0x20c   : > { %1667 = vmatmul.msk.f32.gmra.mxu3 %vm869_vm14, %v1240_v61 }
 0x211   : > { %1670 = vmatmul.msk.f32.vlgmr.msra.gmra.mxu0 %vm869_vm14, %v1137_v59 }
 0x212   : > { %1674 = vmatmul.msk.f32.vlgmr.msra.gmra.mxu1 %vm869_vm14, %v1141_v58 }
 0x213   : > { %1678 = vmatmul.msk.f32.vlgmr.msra.gmra.mxu2 %vm869_vm14, %v1204_v60 }
 0x219   : > { %1671 = vmatmul.msk.f32.gmra.mxu0 %vm869_vm14, %v1276_v2 }
 0x21a   : > { %1675 = vmatmul.msk.f32.gmra.mxu1 %vm869_vm14, %v1312_v3 }
 0x21b   : > { %1679 = vmatmul.msk.f32.gmra.mxu2 %vm869_vm14, %v1348_v4 }
 0x221   : > { %1685 = vmatmul.msk.f32.vlgmr.msrb.gmra.mxu0 %vm781_vm0, %v826_v11 }
 0x27e   : > { %v1168_v12 = vpop.f32.mrf.mxu0 }
 0x27f   : > { %v1197_v13 = vpop.f32.mrf.mxu1 }
 0x280   : > { %v1198_v18 = vadd.f32 %v1197_v13, %v1168_v12 }
 0x286   : > { %v1231_v14 = vpop.f32.mrf.mxu2  ;;  %v1171_v16 = vpop.f32.mrf.mxu0 }
 0x287   : > { %v1200_v17 = vpop.f32.mrf.mxu1  ;;  %v1237_v19 = vadd.f32 %v1231_v14, %v1198_v18  ;;  %v1267_v20 = vpop.f32.mrf.mxu3 }
 0x288   : > { %v1201_v26 = vadd.f32 %v1200_v17, %v1171_v16 }
 0x289   : > { %v1273_v24 = vadd.f32 %v1267_v20, %v1237_v19 }
 0x28e   : > { %v1234_v21 = vpop.f32.mrf.mxu2  ;;  %v1303_v25 = vpop.f32.mrf.mxu0 }
 0x28f   : > { %v1309_v27 = vadd.f32 %v1303_v25, %v1273_v24  ;;  %v1339_v28 = vpop.f32.mrf.mxu1  ;;  %v1238_v29 = vadd.f32 %v1234_v21, %v1201_v26  ;;  %v1270_v31 = vpop.f32.mrf.mxu3 }
 0x291   : > { %v1345_v30 = vadd.f32 %v1339_v28, %v1309_v27  ;;  %v1274_v34 = vadd.f32 %v1270_v31, %v1238_v29 }
 0x296   : > { %v1375_v32 = vpop.f32.mrf.mxu2  ;;  %v1306_v36 = vpop.f32.mrf.mxu0 }
 0x297   : > { %v1381_v35 = vadd.f32 %v1375_v32, %v1345_v30  ;;  %v1310_v38 = vadd.f32 %v1306_v36, %v1274_v34  ;;  %v1342_v40 = vpop.f32.mrf.mxu1 }
 0x299   : > { %v1385_v37 = vadd.f32 %v1384_v33, %v1381_v35  ;;  %v1346_v41 = vadd.f32 %v1342_v40, %v1310_v38 }
 0x29b   : > { %v1680_v39 = vmul.f32 -1.442695, %v1385_v37 }
 0x29d   : > { %1723 = vpow2.f32 %v1680_v39 }
 0x29e   : > { %v1378_v42 = vpop.f32.mrf.mxu2  ;;  %v1479_v6 = vpop.f32.mrf.mxu0 }
 0x29f   : > { %v1382_v43 = vadd.f32 %v1378_v42, %v1346_v41  ;;  %v1480_v7 = vadd.f32 1.0, %v1479_v6 }
 0x2a1   : > { %v1386_v44 = vadd.f32 %v1384_v33, %v1382_v43  ;;  %v1482_v8 = vperm.slane %v1480_v7, 0 }
 0x2a3   : > { %v1724_v45 = vpop.eup %1723  ;;  %v1681_v46 = vmul.f32 -1.442695, %v1386_v44 }
 0x2a4   : > { %v1393_v47 = vadd.f32 1.0, %v1724_v45 }
 0x2a5   : > { %1725 = vpow2.f32 %v1681_v46 }
 0x2a6   : > { %1727 = vrcp.f32 %v1393_v47  ;;  %v1406_v53 = vand.u32 2147483648, %v1393_v47  ;;  %v1404_v55 = vand.u32 2147483647, %v1393_v47  ;;  %vm1400_vm10 = vweird.f32 %v1393_v47 }
 0x2a8   : > { %v1407_v58 = vor.u32 1.1754944e-38, %v1406_v53  ;;  %vm1405_vm12 = vcmp.eq.f32.partialorder %v1404_v55, 8.507059e+37 }
 0x2ab   : > { %v1726_v48 = vpop.eup %1725 }
 0x2ac   : > { %v1728_v49 = vpop.eup %1727  ;;  %v1394_v50 = vadd.f32 1.0, %v1726_v48 }
 0x2ad   : > { %v1396_v51 = vmul.f32 %v1728_v49, %v1393_v47  ;;  %vm1401_vm9 = vweird.f32 %v1728_v49 }
 0x2ae   : > { %1729 = vrcp.f32 %v1394_v50  ;;  %vm1402_vm11 = vmor %vm1400_vm10, %vm1401_vm9  ;;  %v1421_v63 = vand.u32 2147483648, %v1394_v50  ;;  %v1419_v1 = vand.u32 2147483647, %v1394_v50  ;;  %vm1415_vm15 = vweird.f32 %v1394_v50 }
 0x2af   : > { %v1397_v52 = vsub.f32 1.0, %v1396_v51 }
 0x2b0   : > { %v1422_v3 = vor.u32 1.1754944e-38, %v1421_v63  ;;  %vm1420_vm1 = vcmp.eq.f32.partialorder %v1419_v1, 8.507059e+37 }
 0x2b1   : > { %v1398_v54 = vmul.f32 %v1728_v49, %v1397_v52 }
 0x2b3   : > { %v1399_v56 = vadd.f32 %v1728_v49, %v1398_v54 }
 0x2b4   : > { %v1730_v57 = vpop.eup %1729 }
 0x2b5   : > { %v1403_v59 = vsel %vm1402_vm11, %v1728_v49, %v1399_v56  ;;  %v1411_v60 = vmul.f32 %v1730_v57, %v1394_v50  ;;  %vm1416_vm13 = vweird.f32 %v1730_v57 }
 0x2b6   : > { %v1408_v61 = vsel %vm1405_vm12, %v1407_v58, %v1403_v59  ;;  %vm1417_vm0 = vmor %vm1415_vm15, %vm1416_vm13 }
 0x2b7   : > { %1682 = vmatmul.msk.f32.vlgmr.msrb.gmra.mxu3 %vm869_vm14, %v1408_v61  ;;  %v1412_v62 = vsub.f32 1.0, %v1411_v60 }
 0x2b9   : > { %v1413_v0 = vmul.f32 %v1730_v57, %v1412_v62 }
 0x2bb   : > { %v1414_v2 = vadd.f32 %v1730_v57, %v1413_v0 }
 0x2bd   : > { %v1418_v4 = vsel %vm1417_vm0, %v1730_v57, %v1414_v2 }
 0x2be   : > { %v1423_v5 = vsel %vm1420_vm1, %v1422_v3, %v1418_v4 }
 0x2bf   : > { %1683 = vmatmul.msk.f32.gmra.mxu3 %vm869_vm14, %v1423_v5 }
 0x33a   : > { %v1450_v10 = vpop.f32.mrf.mxu3 }
 0x33b   : > { %v1483_v11 = vadd.f32 %v1482_v8, %v1450_v10 }
 0x33d   : > { %v1485_v12 = vmul.f32 %v1483_v11, %v1954_v9 }
 0x33f   : > { %v1487_v13 = vpack.c.bf16 %v1485_v12, %v1485_v12 }
 0x341   : > { %1489 = vst.msk [vmem:[%s498_s29] sm:$0xf] %vm535_vm5, %v1487_v13 }
 0x342   : > { %v1453_v14 = vpop.f32.mrf.mxu3 }
 0x343   : > { %v1484_v16 = vadd.f32 %v1482_v8, %v1453_v14 }
 0x345   : > { %v1486_v17 = vmul.f32 %v1484_v16, %v1958_v15 }
 0x347   : > { %v1488_v18 = vpack.c.bf16 %v1486_v17, %v1486_v17 }
 0x349   : > { %1490 = vst.msk [vmem:[%s498_s29 + $0x4] sm:$0xf] %vm535_vm5, %v1488_v18 }
 0x34a PF: > { %s29_s26 = sadd.s32 1, %s1737_s26  }
 0x34b   : > { %p26_p4 = scmp.ge.s32.totalorder %s29_s26, 4  }
 0x34d   :  { %28 = sbr.rel (!%p26_p4) target bundleno = 5 (0x5), region = 124 }

// kernel: dam_forward.3
= control target key start
LH: loop header
LB: loop body
LE: loop exit
PB: predicated region body
PF: predicated region fallthrough
CT: control target
= control target key end

     0   :  { %s1830_s26 = smov 0   ;;  %s2118_s0 = inlined_call_operand.vmem [shape: bf16[2,16,64], index: 0, kind: input, shape index: {}]   ;;  %s2119_s1 = inlined_call_operand.vmem [shape: bf16[3,64,64], index: 1, kind: input, shape index: {}]   ;;  %s2120_s2 = inlined_call_operand.vmem [shape: f32[1,64], index: 2, kind: input, shape index: {}]   ;;  %s2121_s3 = inlined_call_operand.vmem [shape: f32[64,2], index: 3, kind: input, shape index: {}]   ;;  %s2122_s4 = inlined_call_operand.vmem [shape: f32[1,2], index: 4, kind: input, shape index: {}]   ;;  %s2123_s5 = inlined_call_operand.<no memory space> [shape: f32[1], index: 5, kind: input, shape index: {}]   ;;  %s2124_s6 = inlined_call_operand.vmem [shape: f32[2,2], index: 6, kind: input, shape index: {}]   ;;  %s2125_s7 = inlined_call_operand.vmem [shape: f32[2,64], index: 7, kind: input, shape index: {}]   ;;  %s2126_s8 = inlined_call_operand.vmem [shape: f32[64,16], index: 8, kind: input, shape index: {}]   ;;  %s2127_s9 = inlined_call_operand.vmem [shape: f32[7,16,16], index: 9, kind: input, shape index: {}]   ;;  %s2128_s10 = inlined_call_operand.<no memory space> [shape: f32[1], index: 10, kind: input, shape index: {}]   ;;  %s2129_s11 = inlined_call_operand.<no memory space> [shape: f32[1], index: 11, kind: input, shape index: {}]   ;;  %s2130_s12 = inlined_call_operand.vmem [shape: f32[7,16,16], index: 12, kind: input, shape index: {}]   ;;  %s2131_s14 = inlined_call_operand.vmem [shape: f32[16,64], index: 14, kind: input, shape index: {}]   ;;  %s2132_s15 = inlined_call_operand.vmem [shape: f32[2,16,64], index: 15, kind: output, shape index: {}]   ;;  %s2133_s13 = inlined_call_operand.<no memory space> [shape: f32[1], index: 13, kind: input, shape index: {}]  }
   0x1   :  { %20 = sst [smem:[#allocation5]] %s2123_s5 }
   0x2   :  { %21 = sst [smem:[#allocation6]] %s2128_s10 }
   0x3   :  { %22 = sst [smem:[#allocation7]] %s2129_s11 }
   0x4   :  { %23 = sst [smem:[#allocation8]] %s2133_s13 }
   0x5 LB: > { %s1544_s5 = sadd.s32 4294967295, %s1735_s26   ;;  %p1548_p0 = scmp.ge.s32.totalorder %s1735_s26, 1  ;;  %s1735_s26 = sphi %s1830_s26, %s29_s26  }
   0x6   : > { %p441_p1 = scmp.lt.s32.totalorder %s1735_s26, 3 }
   0x8   : > { %p442_p2 = pnand %p1548_p0, %p441_p1 }
   0x9   : > { %p489_p3 = scmp.lt.s32.totalorder (!%p442_p2), %s1544_s5, 1  ;;  %s776_s27 = sld [smem:[#allocation5]] (!%p442_p2) }
   0xa   : > { %445 = sbr.rel (%p442_p2) target bundleno = 840 (0x348), region = 80  ;;  %s2066_s24 = sld [smem:[#allocation6]] (!%p442_p2) }
   0xb   : > { %s1125_s29 = sld [smem:[#allocation7]] (!%p442_p2) }
   0xc   : > { %s1383_s17 = sld [smem:[#allocation8]] (!%p442_p2) }
   0xf   : > { %v1691_v0 = vld [vmem:[%s2119_s1 + $0x18] sm:$0xff]  ;;  %vm500_vm0 = vcmask 516096   ;;  %vm501_vm1 = vsmask.f32 256  ;;  %v1690_v3 = vld [vmem:[%s2119_s1 + $0x10] sm:$0xff]  ;;  %s2137_s5 = smov (!%p489_p3, %s1544_s5), 1 }
  0x10   : > { %v1699_v1 = vld [vmem:[%s2119_s1 + $0x58] sm:$0xff]  ;;  %658 = vmatpush.bf16.msra.mxu1 %v1691_v0  ;;  %v1698_v4 = vld [vmem:[%s2119_s1 + $0x50] sm:$0xff]  ;;  %vm506_vm2 = vsmask.f32 7938  ;;  %vm1860_vm3 = vmand %vm500_vm0, %vm501_vm1  ;;  %s1686_s25 = sshll.u32 %s2137_s5, 3  ;;  %vm535_vm5 = vcmask 519168  }
  0x11   : > { %v1695_v2 = vld [vmem:[%s2119_s1 + $0x38] sm:$0xff]  ;;  %716 = vmatpush.bf16.msra.mxu2 %v1699_v1  ;;  %v1694_v5 = vld [vmem:[%s2119_s1 + $0x30] sm:$0xff]  ;;  %v503_v7 = vld [vmem:[#allocation2] sm:$0x1]  ;;  %s493_s28 = scalar_lea.vmem %s2118_s0, %s1686_s25  ;;  %vm513_vm6 = vsmask.f32 4368 }
  0x12   : > { %618 = vmatpush.bf16.msra.mxu0 %v1695_v2  ;;  %v1689_v8 = vld [vmem:[%s2119_s1 + $0x8] sm:$0xff]  ;;  %v504_v10 = vsel %vm1860_vm3, 0, %v503_v7  ;;  %vm507_vm4 = vmand %vm500_vm0, %vm506_vm2  ;;  %v511_v14 = vld [vmem:[%s493_s28] sm:$0xf]  ;;  %vm610_vm9 = vcmask 523264   ;;  %vm681_vm10 = vcmask 1046528  }
  0x13   : > { %v1697_v9 = vld [vmem:[%s2119_s1 + $0x48] sm:$0xff]  ;;  %505 = vst [vmem:[#allocation2] sm:$0x1] %v504_v10  ;;  %v512_v15 = vld [vmem:[%s493_s28 + $0x4] sm:$0xf]  ;;  %v516_v16 = vshrl.u32 %v511_v14, 16  ;;  %vm514_vm7 = vmor %vm501_vm1, %vm513_vm6 }
  0x14   : > { %v508_v11 = vld [vmem:[#allocation2 + $0x8] sm:$0x1]  ;;  %659 = vmatpush.bf16.msra.mxu1 %v1690_v3  ;;  %v519_v17 = vshll.u32 %v511_v14, 16  ;;  %v524_v18 = vshrl.u32 %v512_v15, 16  ;;  %v527_v19 = vshll.u32 %v512_v15, 16  ;;  %v1688_v22 = vld [vmem:[%s2119_s1] sm:$0xff]  ;;  %vm536_vm8 = vmand %vm535_vm5, %vm506_vm2 }
  0x15   : > { %v1693_v12 = vld [vmem:[%s2119_s1 + $0x28] sm:$0xff]  ;;  %v509_v13 = vsel %vm507_vm4, 0, %v508_v11  ;;  %717 = vmatpush.bf16.msra.mxu2 %v1698_v4  ;;  %v518_v20 = vrot.slane %v516_v16, 7  ;;  %v1696_v23 = vld [vmem:[%s2119_s1 + $0x40] sm:$0xff]  ;;  %vm573_vm11 = vsmask.f32 7424 }
  0x16   : > { %510 = vst [vmem:[#allocation2 + $0x8] sm:$0x1] %v509_v13  ;;  %619 = vmatpush.bf16.msra.mxu0 %v1694_v5  ;;  %v526_v21 = vrot.slane %v524_v18, 7  ;;  %v1692_v28 = vld [vmem:[%s2119_s1 + $0x20] sm:$0xff]  ;;  %v836_v51 = vld [vmem:[%s2126_s8 + $0x38] sm:$0xff]  ;;  %v835_v52 = vld [vmem:[%s2126_s8 + $0x30] sm:$0xff] }
  0x17   : > { %v521_v24 = vor.u32 %v519_v17, %v518_v20  ;;  %v522_v25 = vrot.slane %v518_v20, 4  ;;  %v834_v53 = vld [vmem:[%s2126_s8 + $0x28] sm:$0xff]  ;;  %v833_v54 = vld [vmem:[%s2126_s8 + $0x20] sm:$0xff]  ;;  %v832_v55 = vld [vmem:[%s2126_s8 + $0x18] sm:$0xff]  ;;  %vm866_vm12 = vcmask 124928   ;;  %vm785_vm13 = vcmask 1041408  }
  0x18   : > { %660 = vmatpush.bf16.msra.mxu1 %v1689_v8  ;;  %v529_v26 = vor.u32 %v527_v19, %v526_v21  ;;  %v531_v27 = vrot.slane %v526_v21, 4  ;;  %v831_v56 = vld [vmem:[%s2126_s8 + $0x10] sm:$0xff]  ;;  %v830_v57 = vld [vmem:[%s2126_s8 + $0x8] sm:$0xff]  ;;  %v829_v58 = vld [vmem:[%s2126_s8] sm:$0xff]  ;;  %vm869_vm14 = vcmask 130048   ;;  %vm781_vm0 = vcmask 15360  }
  0x19   : > { %718 = vmatpush.bf16.msra.mxu2 %v1697_v9  ;;  %v750_v59 = vld [vmem:[%s2121_s3 + $0x38] sm:$0xff]  ;;  %v749_v60 = vld [vmem:[%s2121_s3 + $0x30] sm:$0xff]  ;;  %v748_v61 = vld [vmem:[%s2121_s3 + $0x28] sm:$0xff]  ;;  %vm1131_vm1 = vcmask 128000   ;;  %s1687_s22 = sshll.u32 %s2137_s5, 4 }
  0x1a   : > { %620 = vmatpush.bf16.msra.mxu0 %v1693_v12  ;;  %v537_v29 = vld [vmem:[#allocation2] sm:$0xf]  ;;  %v530_v30 = vsel %vm514_vm7, %v522_v25, %v529_v26  ;;  %763 = vmatpush.msra.mxu3 %v750_v59  ;;  %v746_v63 = vld [vmem:[%s2121_s3 + $0x18] sm:$0xff]  ;;  %v745_v0 = vld [vmem:[%s2121_s3 + $0x10] sm:$0xff]  ;;  %s498_s25 = scalar_lea.vmem %s2132_s15, %s1687_s22 }
  0x1b   : > { %v538_v31 = vsel %vm536_vm8, %v521_v24, %v537_v29  ;;  %541 = vst.msk [vmem:[#allocation2 + $0x4] sm:$0xf] %vm535_vm5, %v530_v30  ;;  %v747_v62 = vld [vmem:[%s2121_s3 + $0x20] sm:$0xff]  ;;  %v744_v1 = vld [vmem:[%s2121_s3 + $0x8] sm:$0xff]  ;;  %v1627_v25 = vld [vmem:[%s2127_s9 + $0x18] sm:$0xff] }
  0x1c   : > { %661 = vmatpush.bf16.msra.mxu1 %v1688_v22  ;;  %539 = vst [vmem:[#allocation2] sm:$0xf] %v538_v31  ;;  %764 = vmatpush.msra.mxu3 %v749_v60  ;;  %v743_v2 = vld [vmem:[%s2121_s3] sm:$0xff]  ;;  %v875_v26 = vld [vmem:[%s2127_s9 + $0x8] sm:$0xff]  ;;  %v1626_v29 = vld [vmem:[%s2127_s9 + $0x10] sm:$0xff] }
  0x1d   : > { %v542_v32 = vld [vmem:[#allocation2 + $0x8] sm:$0x1]  ;;  %719 = vmatpush.bf16.msra.mxu2 %v1696_v23  ;;  %v1716_v6 = vld [vmem:[%s2120_s2] ss:$0 sm:$0xff]  ;;  %v1636_v31 = vld [vmem:[%s2127_s9 + $0x30] sm:$0xff] }
  0x1e   : > { %v543_v33 = vsel %vm1860_vm3, %v531_v27, %v542_v32  ;;  %621 = vmatpush.bf16.msra.mxu0 %v1692_v28  ;;  %765 = vmatpush.msra.mxu3 %v748_v61  ;;  %v1637_v27 = vld [vmem:[%s2127_s9 + $0x38] sm:$0xff]  ;;  %v1737_v28 = vmov 0.0   ;;  %v874_v30 = vld [vmem:[%s2127_s9] sm:$0xff]  ;;  %v1641_v32 = vld [vmem:[%s2127_s9 + $0x48] sm:$0xff] }
  0x1f   : > { %544 = vst [vmem:[#allocation2 + $0x8] sm:$0x1] %v543_v33  ;;  %v1645_v33 = vld [vmem:[%s2127_s9 + $0x58] sm:$0xff] }
  0x20   : > { %766 = vmatpush.msra.mxu3 %v747_v62  ;;  %867 = vst.msk [vmem:[#allocation3] sm:$0x7] %vm866_vm12, %v1737_v28  ;;  %901 = vmatpush.msrb.mxu1 %v1627_v25  ;;  %v1674_v25 = vld [vmem:[%s2130_s12 + $0x60] sm:$0xff] }
  0x21   : > { %930 = vmatpush.msrb.mxu2 %v875_v26  ;;  %868 = vst.msk [vmem:[#allocation3 + $0x13] sm:$0x7] %vm866_vm12, %v1737_v28  ;;  %v1666_v26 = vld [vmem:[%s2130_s12 + $0x40] sm:$0xff] }
  0x22   : > { %v1704_v36 = vld [vmem:[#allocation2] sm:$0xf0]  ;;  %851 = vmatpush.msrb.mxu0 %v836_v51  ;;  %767 = vmatpush.msra.mxu3 %v746_v63  ;;  %v777_v51 = vstv %s776_s27  ;;  %1132 = vst.msk [vmem:[#allocation4] sm:$0x3f] %vm1131_vm1, %v1737_v28 }
  0x23   : > { %v1705_v34 = vld [vmem:[#allocation2] sm:$0xe]  ;;  %902 = vmatpush.msrb.mxu1 %v1626_v29  ;;  %931 = vmatpush.msrb.mxu2 %v874_v30  ;;  %1133 = vst.msk [vmem:[#allocation4 + $0x16] sm:$0x3f] %vm1131_vm1, %v1737_v28 }
  0x24   : > { %v1701_v35 = vld [vmem:[#allocation2] sm:$0xff]   ;;  %v1706_v39 = vor.u32 %v1705_v34, %v1704_v36  ;;  %852 = vmatpush.msrb.mxu0 %v835_v52  ;;  %768 = vmatpush.msra.mxu3 %v745_v0 }
  0x25   : > { %v577_v37 = vshll.u32 %v1701_v35, 16  ;;  %1594 = vmatmul.msk.bf16.vlgmr.msra.gmra.mxu1 %vm610_vm9, %v1701_v35  ;;  %v575_v40 = vshrl.u32 %v1701_v35, 16  ;;  %v1640_v34 = vld [vmem:[%s2127_s9 + $0x40] sm:$0xff]  ;;  %v1644_v35 = vld [vmem:[%s2127_s9 + $0x50] sm:$0xff] }
  0x26   : > { %v555_v38 = vld [vmem:[#allocation2 + $0x8] sm:$0x1]  ;;  %v682_v44 = vrot.slane %v1706_v39, 1  ;;  %853 = vmatpush.msrb.mxu0 %v834_v53  ;;  %769 = vmatpush.msra.mxu3 %v744_v1  ;;  %v780_v36 = vld [vmem:[%s2124_s6] sm:$0x3] }
  0x27   : > { %v570_v41 = vunpack.c.l.b16 %v555_v38  ;;  %v579_v42 = vrot.slane %v577_v37, 1  ;;  %1036 = vmatpush.msra.mxu1 %v1641_v32  ;;  %v1633_v38 = vld [vmem:[%s2127_s9 + $0x28] sm:$0xff]  ;;  %v1632_v39 = vld [vmem:[%s2127_s9 + $0x20] sm:$0xff] }
  0x28   : > { %854 = vmatpush.msrb.mxu0 %v833_v54  ;;  %770 = vmatpush.msra.mxu3 %v743_v2  ;;  %v1659_v2 = vld [vmem:[%s2130_s12 + $0x28] sm:$0xff] }
  0x29   : > { %v572_v43 = vpack.c.b16 %v570_v41, %v570_v41  ;;  %v580_v45 = vor.u32 %v579_v42, %v575_v40  ;;  %1037 = vmatpush.msra.mxu1 %v1640_v34 }
  0x2a   : > { %855 = vmatpush.msrb.mxu0 %v832_v55  ;;  %1621 = vmatpush.msk.msrb.mxu3 %vm785_vm13, %v780_v36 }
  0x2b   : > { %v683_v46 = vrot.slane %v572_v43, 1  ;;  %v582_v47 = vshll.u32 %v572_v43, 16 }
  0x2c   : > { %856 = vmatpush.msrb.mxu0 %v831_v56  ;;  %v1649_v56 = vld [vmem:[%s2127_s9 + $0x68] sm:$0xff] }
  0x2d   : > { %v684_v48 = vsel %vm681_vm10, %v682_v44, %v683_v46  ;;  %v584_v49 = vrot.slane %v582_v47, 1 }
  0x2e   : > { %1619 = vmatmul.msk.bf16.vlgmr.msra.gmra.mxu2 %vm610_vm9, %v684_v48  ;;  %857 = vmatpush.msrb.mxu0 %v830_v57 }
  0x2f   : > { %v585_v50 = vsel %vm573_vm11, %v580_v45, %v584_v49  ;;  %1072 = vmatpush.msra.mxu2 %v1645_v33  ;;  %v751_v49 = vld [vmem:[%s2122_s4] sm:$0x1] }
  0x30   : > { %1577 = vmatmul.msk.bf16.vlgmr.msra.gmra.mxu0 %vm610_vm9, %v585_v50 }
  0x31   : > { %858 = vmatpush.msrb.mxu0 %v829_v58  ;;  %1073 = vmatpush.msra.mxu2 %v1644_v35  ;;  %v1648_v58 = vld [vmem:[%s2127_s9 + $0x60] sm:$0xff]  ;;  %v1120_v35 = vstv %s2066_s24 }
  0x33   : > { %1000 = vmatpush.msra.mxu0 %v1637_v27  ;;  %v1670_v27 = vld [vmem:[%s2130_s12 + $0x50] sm:$0xff] }
  0x35   : > { %1001 = vmatpush.msra.mxu0 %v1636_v31 }
  0xa2   : > { %v663_v3 = vpop.f32.mrf.mxu1 }
  0xaa   : > { %v665_v11 = vpop.f32.mrf.mxu1 }
  0xad   : > { %v623_v4 = vpop.f32.mrf.mxu0 }
  0xae   : > { %v664_v5 = vadd.f32 %v663_v3, %v623_v4  ;;  %v1653_v3 = vld [vmem:[%s2130_s12 + $0x18] sm:$0xff]  ;;  %v1139_v4 = vld [vmem:[%s2130_s12 + $0x8] sm:$0xff] }
  0xb1   : > { %v721_v7 = vpop.f32.mrf.mxu2 }
  0xb2   : > { %v726_v8 = vadd.f32 %v721_v7, %v664_v5 }
  0xb4   : > { %v1950_v9 = vadd.f32 %v1716_v6, %v726_v8  ;;  %v1658_v8 = vld [vmem:[%s2130_s12 + $0x20] sm:$0xff] }
  0xb5   : > { %v625_v10 = vpop.f32.mrf.mxu0 }
  0xb6   : > { %1624 = vmatmul.msk.f32.vlgmr.msrb.gmra.mxu0 %vm610_vm9, %v1950_v9  ;;  %v666_v12 = vadd.f32 %v665_v11, %v625_v10  ;;  %v734_v16 = vsel %vm610_vm9, %v1950_v9, 0.0  ;;  %v1652_v10 = vld [vmem:[%s2130_s12 + $0x10] sm:$0xff]  ;;  %v1138_v11 = vld [vmem:[%s2130_s12] sm:$0xff] }
  0xb7   : > { %1165 = vmatpush.msrb.mxu0 %v1653_v3 }
  0xb9   : > { %v723_v13 = vpop.f32.mrf.mxu2  ;;  %1166 = vmatpush.msrb.mxu0 %v1652_v10 }
  0xba   : > { %v727_v14 = vadd.f32 %v723_v13, %v666_v12  ;;  %v1662_v13 = vld [vmem:[%s2130_s12 + $0x30] sm:$0xff] }
  0xbc   : > { %v1954_v15 = vadd.f32 %v1716_v6, %v727_v14  ;;  %v1663_v6 = vld [vmem:[%s2130_s12 + $0x38] sm:$0xff]  ;;  %v1675_v14 = vld [vmem:[%s2130_s12 + $0x68] sm:$0xff] }
  0xbe   : > { %v735_v17 = vsel %vm610_vm9, %v1954_v15, 0.0  ;;  %1625 = vmatmul.msk.f32.gmra.mxu0 %vm610_vm9, %v1954_v15 }
  0xbf   : > { %v736_v18 = vadd.f32 %v735_v17, %v734_v16  ;;  %v1667_v16 = vld [vmem:[%s2130_s12 + $0x48] sm:$0xff] }
  0xc1   : > { %v737_v19 = vrot.slane %v736_v18, 4 }
  0xc3   : > { %v738_v20 = vadd.f32 %v737_v19, %v736_v18  ;;  %v1671_v18 = vld [vmem:[%s2130_s12 + $0x58] sm:$0xff] }
  0xc5   : > { %v739_v21 = vrot.slane %v738_v20, 2 }
  0xc7   : > { %v740_v22 = vadd.f32 %v739_v21, %v738_v20 }
  0xc9   : > { %v741_v23 = vrot.slane %v740_v22, 1 }
  0xcb   : > { %v742_v24 = vadd.f32 %v741_v23, %v740_v22 }
  0xcd   : > { %1620 = vmatmul.msk.f32.vlgmr.msra.gmra.mxu3 %vm610_vm9, %v742_v24 }
  0xce   : > { %964 = vmatpush.msra.mxu3 %v1633_v38 }
  0xd0   : > { %965 = vmatpush.msra.mxu3 %v1632_v39  ;;  %v1126_v39 = vstv %s1125_s29 }
 0x133   : > { %v860_v37 = vpop.f32.mrf.mxu0 }
 0x134   : > { %870 = vst.msk [vmem:[#allocation3 + $0x3] sm:$0xff] %vm869_vm14, %v860_v37 }
 0x13b   : > { %v863_v40 = vpop.f32.mrf.mxu0  ;;  %v876_v41 = vld [vmem:[#allocation3 + $0x1] sm:$0xff] }
 0x13c   : > { %v872_v42 = vld [vmem:[#allocation3] sm:$0xff]  ;;  %871 = vst.msk [vmem:[#allocation3 + $0xb] sm:$0xff] %vm869_vm14, %v863_v40  ;;  %1628 = vmatmul.msk.f32.vlgmr.msrb.gmra.mxu1 %vm869_vm14, %v876_v41 }
 0x13d   : > { %v975_v43 = vld [vmem:[#allocation3 + $0x3] sm:$0xff]  ;;  %1630 = vmatmul.msk.f32.vlgmr.msrb.gmra.mxu2 %vm869_vm14, %v872_v42  ;;  %1194 = vmatpush.msrb.mxu1 %v1139_v4 }
 0x13e   : > { %1638 = vmatmul.msk.f32.vlgmr.msra.gmra.mxu0 %vm869_vm14, %v975_v43  ;;  %v939_v59 = vld [vmem:[#allocation3 + $0x2] sm:$0xff]  ;;  %1228 = vmatpush.msrb.mxu2 %v1659_v2 }
 0x13f   : > { %1195 = vmatpush.msrb.mxu1 %v1138_v11  ;;  %1300 = vmatpush.msra.mxu0 %v1667_v16 }
 0x140   : > { %1229 = vmatpush.msrb.mxu2 %v1658_v8 }
 0x141   : > { %1301 = vmatpush.msra.mxu0 %v1666_v26 }
 0x143   : > { %v877_v44 = vld [vmem:[#allocation3 + $0x9] sm:$0xff] }
 0x144   : > { %v873_v45 = vld [vmem:[#allocation3 + $0x8] sm:$0xff]  ;;  %1629 = vmatmul.msk.f32.gmra.mxu1 %vm869_vm14, %v877_v44 }
 0x145   : > { %v976_v46 = vld [vmem:[#allocation3 + $0xb] sm:$0xff]  ;;  %1631 = vmatmul.msk.f32.gmra.mxu2 %vm869_vm14, %v873_v45 }
 0x146   : > { %1639 = vmatmul.msk.f32.gmra.mxu0 %vm869_vm14, %v976_v46  ;;  %v1011_v47 = vld [vmem:[#allocation3 + $0x4] sm:$0xff]  ;;  %v1012_v54 = vld [vmem:[#allocation3 + $0xc] sm:$0xff] }
 0x147   : > { %v1047_v48 = vld [vmem:[#allocation3 + $0x5] sm:$0xff]  ;;  %v1048_v55 = vld [vmem:[#allocation3 + $0xd] sm:$0xff] }
 0x148   : > { %v940_v60 = vld [vmem:[#allocation3 + $0xa] sm:$0xff] }
 0x149   : > { %v1083_v61 = vld [vmem:[#allocation3 + $0x6] sm:$0xff]  ;;  %v1084_v62 = vld [vmem:[#allocation3 + $0xe] sm:$0xff] }
 0x14c   : > { %1642 = vmatmul.msk.f32.vlgmr.msra.gmra.mxu1 %vm869_vm14, %v1011_v47 }
 0x14d   : > { %1646 = vmatmul.msk.f32.vlgmr.msra.gmra.mxu2 %vm869_vm14, %v1047_v48  ;;  %1336 = vmatpush.msra.mxu1 %v1671_v18 }
 0x14e   : > { %1372 = vmatpush.msra.mxu2 %v1675_v14 }
 0x14f   : > { %1337 = vmatpush.msra.mxu1 %v1670_v27 }
 0x150   : > { %v772_v50 = vpop.f32.mrf.mxu3  ;;  %1373 = vmatpush.msra.mxu2 %v1674_v25 }
 0x151   : > { %v773_v52 = vadd.f32 %v772_v50, %v751_v49 }
 0x153   : > { %vm775_vm15 = vcmp.ge.f32.partialorder %v773_v52, 0.0  ;;  %v778_v53 = vmul.f32 %v777_v51, %v773_v52  ;;  %v828_v51 = vld [vmem:[%s2125_s7] sm:$0x3] }
 0x154   : > { %1643 = vmatmul.msk.f32.gmra.mxu1 %vm869_vm14, %v1012_v54 }
 0x155   : > { %1647 = vmatmul.msk.f32.gmra.mxu2 %vm869_vm14, %v1048_v55  ;;  %v779_v57 = vsel %vm775_vm15, %v773_v52, %v778_v53 }
 0x156   : > { %1622 = vmatmul.msk.f32.vlgmr.msrb.gmra.mxu3 %vm781_vm0, %v779_v57 }
 0x157   : > { %1108 = vmatpush.msrb.mxu3 %v1649_v56 }
 0x159   : > { %1109 = vmatpush.msrb.mxu3 %v1648_v58 }
 0x15e   : > { %1634 = vmatmul.msk.f32.vlgmr.msra.gmra.mxu3 %vm869_vm14, %v939_v59 }
 0x15f   : > { %1264 = vmatpush.msra.mxu3 %v1663_v6 }
 0x161   : > { %1265 = vmatpush.msra.mxu3 %v1662_v13 }
 0x166   : > { %1635 = vmatmul.msk.f32.gmra.mxu3 %vm869_vm14, %v940_v60 }
 0x16e   : > { %1650 = vmatmul.msk.f32.vlgmr.msrb.gmra.mxu3 %vm869_vm14, %v1083_v61 }
 0x176   : > { %1651 = vmatmul.msk.f32.gmra.mxu3 %vm869_vm14, %v1084_v62 }
 0x1b9   : > { %v904_v63 = vpop.f32.mrf.mxu1 }
 0x1bb   : > { %v1003_v20 = vpop.f32.mrf.mxu0 }
 0x1c0   : > { %v933_v0 = vpop.f32.mrf.mxu2 }
 0x1c1   : > { %v907_v5 = vpop.f32.mrf.mxu1  ;;  %v934_v12 = vadd.f32 %v933_v0, %v904_v63 }
 0x1c3   : > { %v1006_v31 = vpop.f32.mrf.mxu0 }
 0x1c8   : > { %v936_v17 = vpop.f32.mrf.mxu2 }
 0x1c9   : > { %v1039_v22 = vpop.f32.mrf.mxu1  ;;  %v937_v24 = vadd.f32 %v936_v17, %v907_v5 }
 0x1d0   : > { %v1075_v30 = vpop.f32.mrf.mxu2 }
 0x1d1   : > { %v1042_v37 = vpop.f32.mrf.mxu1 }
 0x1d8   : > { %v1078_v43 = vpop.f32.mrf.mxu2 }
 0x1d9   : > { %v806_v1 = vpop.f32.mrf.mxu3 }
 0x1da   : > { %v1623_v38 = vmul.f32 -1.442695, %v806_v1 }
 0x1dc   : > { %1717 = vpow2.f32 %v1623_v38 }
 0x1e1   : > { %v967_v7 = vpop.f32.mrf.mxu3 }
 0x1e2   : > { %v973_v19 = vadd.f32 %v967_v7, %v934_v12  ;;  %v1718_v49 = vpop.eup %1717 }
 0x1e3   : > { %v812_v52 = vadd.f32 1.0, %v1718_v49 }
 0x1e4   : > { %v1009_v21 = vadd.f32 %v1003_v20, %v973_v19 }
 0x1e5   : > { %1719 = vrcp.f32 %v812_v52  ;;  %v824_v6 = vand.u32 2147483648, %v812_v52  ;;  %vm818_vm5 = vweird.f32 %v812_v52  ;;  %v822_v7 = vand.u32 2147483647, %v812_v52 }
 0x1e6   : > { %v1045_v29 = vadd.f32 %v1039_v22, %v1009_v21  ;;  %v1426_v22 = vld [vmem:[%s2131_s14 + $0x8] sm:$0xff] }
 0x1e7   : > { %v825_v10 = vor.u32 1.1754944e-38, %v824_v6  ;;  %vm823_vm7 = vcmp.eq.f32.partialorder %v822_v7, 8.507059e+37  ;;  %1447 = vmatpush.msrb.mxu3 %v1426_v22 }
 0x1e8   : > { %v1081_v33 = vadd.f32 %v1075_v30, %v1045_v29 }
 0x1e9   : > { %v970_v23 = vpop.f32.mrf.mxu3 }
 0x1ea   : > { %v974_v28 = vadd.f32 %v970_v23, %v937_v24  ;;  %v1425_v23 = vld [vmem:[%s2131_s14] sm:$0xff] }
 0x1eb   : > { %v1720_v62 = vpop.eup %1719  ;;  %1448 = vmatpush.msrb.mxu3 %v1425_v23 }
 0x1ec   : > { %v1010_v32 = vadd.f32 %v1006_v31, %v974_v28  ;;  %v814_v63 = vmul.f32 %v1720_v62, %v812_v52  ;;  %vm819_vm4 = vweird.f32 %v1720_v62 }
 0x1ed   : > { %vm820_vm6 = vmor %vm818_vm5, %vm819_vm4 }
 0x1ee   : > { %v1046_v41 = vadd.f32 %v1042_v37, %v1010_v32  ;;  %v815_v0 = vsub.f32 1.0, %v814_v63 }
 0x1f0   : > { %v1082_v45 = vadd.f32 %v1078_v43, %v1046_v41  ;;  %v816_v1 = vmul.f32 %v1720_v62, %v815_v0 }
 0x1f1   : > { %v1111_v34 = vpop.f32.mrf.mxu3 }
 0x1f2   : > { %v1117_v36 = vadd.f32 %v1111_v34, %v1081_v33  ;;  %v817_v5 = vadd.f32 %v1720_v62, %v816_v1  ;;  %v1384_v33 = vstv %s1383_s17 }
 0x1f4   : > { %v1121_v40 = vadd.f32 %v1120_v35, %v1117_v36  ;;  %v821_v8 = vsel %vm820_vm6, %v1720_v62, %v817_v5 }
 0x1f5   : > { %v826_v11 = vsel %vm823_vm7, %v825_v10, %v821_v8 }
 0x1f6   : > { %vm1123_vm2 = vcmp.ge.f32.partialorder %v1121_v40, 0.0  ;;  %v1127_v42 = vmul.f32 %v1126_v39, %v1121_v40 }
 0x1f8   : > { %v1129_v44 = vsel %vm1123_vm2, %v1121_v40, %v1127_v42 }
 0x1f9   : > { %1134 = vst.msk [vmem:[#allocation4 + $0x6] sm:$0xff] %vm869_vm14, %v1129_v44  ;;  %v1114_v46 = vpop.f32.mrf.mxu3 }
 0x1fa   : > { %v1118_v47 = vadd.f32 %v1114_v46, %v1082_v45 }
 0x1fc   : > { %v1122_v48 = vadd.f32 %v1120_v35, %v1118_v47 }
 0x1fe   : > { %vm1124_vm3 = vcmp.ge.f32.partialorder %v1122_v48, 0.0  ;;  %v1128_v50 = vmul.f32 %v1126_v39, %v1122_v48 }
 0x200   : > { %v1130_v53 = vsel %vm1124_vm3, %v1122_v48, %v1128_v50  ;;  %v1140_v54 = vld [vmem:[#allocation4 + $0x2] sm:$0xff] }
 0x201   : > { %v1136_v55 = vld [vmem:[#allocation4] sm:$0xff]  ;;  %1135 = vst.msk [vmem:[#allocation4 + $0xe] sm:$0xff] %vm869_vm14, %v1130_v53  ;;  %1654 = vmatmul.msk.f32.vlgmr.msrb.gmra.mxu0 %vm869_vm14, %v1140_v54 }
 0x202   : > { %v1203_v56 = vld [vmem:[#allocation4 + $0x4] sm:$0xff]  ;;  %1656 = vmatmul.msk.f32.vlgmr.msrb.gmra.mxu1 %vm869_vm14, %v1136_v55  ;;  %1682 = vmatpush.msk.msrb.mxu0 %vm785_vm13, %v828_v51 }
 0x203   : > { %v1239_v57 = vld [vmem:[#allocation4 + $0x6] sm:$0xff]  ;;  %1660 = vmatmul.msk.f32.vlgmr.msrb.gmra.mxu2 %vm869_vm14, %v1203_v56 }
 0x204   : > { %1664 = vmatmul.msk.f32.vlgmr.msra.gmra.mxu3 %vm869_vm14, %v1239_v57 }
 0x208   : > { %v1141_v58 = vld [vmem:[#allocation4 + $0xa] sm:$0xff]  ;;  %v1312_v3 = vld [vmem:[#allocation4 + $0x12] sm:$0xff] }
 0x209   : > { %v1137_v59 = vld [vmem:[#allocation4 + $0x8] sm:$0xff]  ;;  %1655 = vmatmul.msk.f32.gmra.mxu0 %vm869_vm14, %v1141_v58  ;;  %v1276_v2 = vld [vmem:[#allocation4 + $0x10] sm:$0xff] }
 0x20a   : > { %v1204_v60 = vld [vmem:[#allocation4 + $0xc] sm:$0xff]  ;;  %1657 = vmatmul.msk.f32.gmra.mxu1 %vm869_vm14, %v1137_v59  ;;  %v1348_v4 = vld [vmem:[#allocation4 + $0x14] sm:$0xff] }
 0x20b   : > { %v1240_v61 = vld [vmem:[#allocation4 + $0xe] sm:$0xff]  ;;  %1661 = vmatmul.msk.f32.gmra.mxu2 %vm869_vm14, %v1204_v60 }
 0x20c   : > { %1665 = vmatmul.msk.f32.gmra.mxu3 %vm869_vm14, %v1240_v61 }
 0x211   : > { %1668 = vmatmul.msk.f32.vlgmr.msra.gmra.mxu0 %vm869_vm14, %v1137_v59 }
 0x212   : > { %1672 = vmatmul.msk.f32.vlgmr.msra.gmra.mxu1 %vm869_vm14, %v1141_v58 }
 0x213   : > { %1676 = vmatmul.msk.f32.vlgmr.msra.gmra.mxu2 %vm869_vm14, %v1204_v60 }
 0x219   : > { %1669 = vmatmul.msk.f32.gmra.mxu0 %vm869_vm14, %v1276_v2 }
 0x21a   : > { %1673 = vmatmul.msk.f32.gmra.mxu1 %vm869_vm14, %v1312_v3 }
 0x21b   : > { %1677 = vmatmul.msk.f32.gmra.mxu2 %vm869_vm14, %v1348_v4 }
 0x221   : > { %1683 = vmatmul.msk.f32.vlgmr.msrb.gmra.mxu0 %vm781_vm0, %v826_v11 }
 0x27e   : > { %v1168_v12 = vpop.f32.mrf.mxu0 }
 0x27f   : > { %v1197_v13 = vpop.f32.mrf.mxu1 }
 0x280   : > { %v1198_v18 = vadd.f32 %v1197_v13, %v1168_v12 }
 0x286   : > { %v1231_v14 = vpop.f32.mrf.mxu2  ;;  %v1171_v16 = vpop.f32.mrf.mxu0 }
 0x287   : > { %v1200_v17 = vpop.f32.mrf.mxu1  ;;  %v1237_v19 = vadd.f32 %v1231_v14, %v1198_v18  ;;  %v1267_v20 = vpop.f32.mrf.mxu3 }
 0x288   : > { %v1201_v26 = vadd.f32 %v1200_v17, %v1171_v16 }
 0x289   : > { %v1273_v24 = vadd.f32 %v1267_v20, %v1237_v19 }
 0x28e   : > { %v1234_v21 = vpop.f32.mrf.mxu2  ;;  %v1303_v25 = vpop.f32.mrf.mxu0 }
 0x28f   : > { %v1309_v27 = vadd.f32 %v1303_v25, %v1273_v24  ;;  %v1339_v28 = vpop.f32.mrf.mxu1  ;;  %v1238_v29 = vadd.f32 %v1234_v21, %v1201_v26  ;;  %v1270_v31 = vpop.f32.mrf.mxu3 }
 0x291   : > { %v1345_v30 = vadd.f32 %v1339_v28, %v1309_v27  ;;  %v1274_v34 = vadd.f32 %v1270_v31, %v1238_v29 }
 0x296   : > { %v1375_v32 = vpop.f32.mrf.mxu2  ;;  %v1306_v36 = vpop.f32.mrf.mxu0 }
 0x297   : > { %v1381_v35 = vadd.f32 %v1375_v32, %v1345_v30  ;;  %v1310_v38 = vadd.f32 %v1306_v36, %v1274_v34  ;;  %v1342_v40 = vpop.f32.mrf.mxu1 }
 0x299   : > { %v1385_v37 = vadd.f32 %v1384_v33, %v1381_v35  ;;  %v1346_v41 = vadd.f32 %v1342_v40, %v1310_v38 }
 0x29b   : > { %v1678_v39 = vmul.f32 -1.442695, %v1385_v37 }
 0x29d   : > { %1721 = vpow2.f32 %v1678_v39 }
 0x29e   : > { %v1378_v42 = vpop.f32.mrf.mxu2  ;;  %v1479_v6 = vpop.f32.mrf.mxu0 }
 0x29f   : > { %v1382_v43 = vadd.f32 %v1378_v42, %v1346_v41  ;;  %v1480_v7 = vadd.f32 1.0, %v1479_v6 }
 0x2a1   : > { %v1386_v44 = vadd.f32 %v1384_v33, %v1382_v43  ;;  %v1482_v8 = vperm.slane %v1480_v7, 0 }
 0x2a3   : > { %v1722_v45 = vpop.eup %1721  ;;  %v1679_v46 = vmul.f32 -1.442695, %v1386_v44 }
 0x2a4   : > { %v1393_v47 = vadd.f32 1.0, %v1722_v45 }
 0x2a5   : > { %1723 = vpow2.f32 %v1679_v46 }
 0x2a6   : > { %1725 = vrcp.f32 %v1393_v47  ;;  %v1406_v53 = vand.u32 2147483648, %v1393_v47  ;;  %v1404_v55 = vand.u32 2147483647, %v1393_v47  ;;  %vm1400_vm10 = vweird.f32 %v1393_v47 }
 0x2a8   : > { %v1407_v58 = vor.u32 1.1754944e-38, %v1406_v53  ;;  %vm1405_vm12 = vcmp.eq.f32.partialorder %v1404_v55, 8.507059e+37 }
 0x2ab   : > { %v1724_v48 = vpop.eup %1723 }
 0x2ac   : > { %v1726_v49 = vpop.eup %1725  ;;  %v1394_v50 = vadd.f32 1.0, %v1724_v48 }
 0x2ad   : > { %v1396_v51 = vmul.f32 %v1726_v49, %v1393_v47  ;;  %vm1401_vm8 = vweird.f32 %v1726_v49 }
 0x2ae   : > { %1727 = vrcp.f32 %v1394_v50  ;;  %vm1402_vm11 = vmor %vm1400_vm10, %vm1401_vm8  ;;  %v1421_v63 = vand.u32 2147483648, %v1394_v50  ;;  %v1419_v1 = vand.u32 2147483647, %v1394_v50  ;;  %vm1415_vm15 = vweird.f32 %v1394_v50 }
 0x2af   : > { %v1397_v52 = vsub.f32 1.0, %v1396_v51 }
 0x2b0   : > { %v1422_v3 = vor.u32 1.1754944e-38, %v1421_v63  ;;  %vm1420_vm1 = vcmp.eq.f32.partialorder %v1419_v1, 8.507059e+37 }
 0x2b1   : > { %v1398_v54 = vmul.f32 %v1726_v49, %v1397_v52 }
 0x2b3   : > { %v1399_v56 = vadd.f32 %v1726_v49, %v1398_v54 }
 0x2b4   : > { %v1728_v57 = vpop.eup %1727 }
 0x2b5   : > { %v1403_v59 = vsel %vm1402_vm11, %v1726_v49, %v1399_v56  ;;  %v1411_v60 = vmul.f32 %v1728_v57, %v1394_v50  ;;  %vm1416_vm13 = vweird.f32 %v1728_v57 }
 0x2b6   : > { %v1408_v61 = vsel %vm1405_vm12, %v1407_v58, %v1403_v59  ;;  %vm1417_vm0 = vmor %vm1415_vm15, %vm1416_vm13 }
 0x2b7   : > { %1680 = vmatmul.msk.f32.vlgmr.msrb.gmra.mxu3 %vm869_vm14, %v1408_v61  ;;  %v1412_v62 = vsub.f32 1.0, %v1411_v60 }
 0x2b9   : > { %v1413_v0 = vmul.f32 %v1728_v57, %v1412_v62 }
 0x2bb   : > { %v1414_v2 = vadd.f32 %v1728_v57, %v1413_v0 }
 0x2bd   : > { %v1418_v4 = vsel %vm1417_vm0, %v1728_v57, %v1414_v2 }
 0x2be   : > { %v1423_v5 = vsel %vm1420_vm1, %v1422_v3, %v1418_v4 }
 0x2bf   : > { %1681 = vmatmul.msk.f32.gmra.mxu3 %vm869_vm14, %v1423_v5 }
 0x33a   : > { %v1450_v10 = vpop.f32.mrf.mxu3 }
 0x33b   : > { %v1483_v11 = vadd.f32 %v1482_v8, %v1450_v10 }
 0x33d   : > { %v1485_v12 = vmul.f32 %v1483_v11, %v1950_v9 }
 0x33f   : > { %1487 = vst.msk [vmem:[%s498_s25] sm:$0xff] %vm610_vm9, %v1485_v12 }
 0x342   : > { %v1453_v13 = vpop.f32.mrf.mxu3 }
 0x343   : > { %v1484_v14 = vadd.f32 %v1482_v8, %v1453_v13 }
 0x345   : > { %v1486_v16 = vmul.f32 %v1484_v14, %v1954_v15 }
 0x347   : > { %1488 = vst.msk [vmem:[%s498_s25 + $0x8] sm:$0xff] %vm610_vm9, %v1486_v16 }
 0x348 PF: > { %s29_s26 = sadd.s32 1, %s1735_s26  }
 0x349   : > { %p26_p4 = scmp.ge.s32.totalorder %s29_s26, 4  }
 0x34b   :  { %28 = sbr.rel (!%p26_p4) target bundleno = 5 (0x5), region = 124 }

</bundles_post_ra>
